<compile_context>
chip_gen: v5e
topology: v5e:2x2
jax: 0.10.0
libtpu: 0.0.40
codegen_flags: <defaults>
</compile_context>

<pallas_src>
import functools

import jax
import jax.numpy as jnp
from jax.experimental import pallas as pl
from jax.experimental.pallas import tpu as pltpu


VMEM_LIMIT_BYTES = 32 * 1024 * 1024   # safe on v5e/v6e/v7x; tiles sized well below


def _pick_tile(m, target=512):
    """Largest divisor of m that is a multiple of 8 and <= target, else m (full)."""
    best = None
    for t in range(8, min(m, target) + 1, 8):
        if m % t == 0:
            best = t
    return best if best is not None else m


def _compiler_params():
    return pltpu.CompilerParams(
        dimension_semantics=("parallel",),       # megacore-split row tiles on v7x
        vmem_limit_bytes=VMEM_LIMIT_BYTES,
    )


# ----------------------------- Pallas kernels ------------------------------

def _matmul_bias_act_kernel(x_ref, w_ref, b_ref, o_ref, *, relu):
    # (TILE_M, K) @ (K, N) -> f32 accumulate on the MXU; bias + ReLU fused.
    acc = jnp.dot(x_ref[...].astype(w_ref.dtype), w_ref[...],
                  preferred_element_type=jnp.float32)
    acc = acc + b_ref[...]                       # single VPU add (no K-grid here)
    if relu:
        acc = jnp.maximum(acc, 0.0)
    o_ref[...] = acc.astype(o_ref.dtype)


def _mlp_head_kernel(x_ref, w1_ref, b1_ref, w2_ref, b2_ref, o_ref):
    # fc1 + ReLU + fc2 + softmax in one grid step; hidden stays in vregs.
    h = jnp.dot(x_ref[...].astype(w1_ref.dtype), w1_ref[...],
                preferred_element_type=jnp.float32)
    h = jnp.maximum(h + b1_ref[...], 0.0)
    logits = jnp.dot(h.astype(w2_ref.dtype), w2_ref[...],
                     preferred_element_type=jnp.float32)
    logits = logits + b2_ref[...]
    m = jnp.max(logits, axis=-1, keepdims=True)
    e = jnp.exp(logits - m)                      # EUP
    s = jnp.sum(e, axis=-1, keepdims=True)
    o_ref[...] = (e / s).astype(o_ref.dtype)     # exact divide: N=10, negligible


def _max4_kernel(a_ref, b_ref, c_ref, d_ref, o_ref):
    # elementwise max over the four 2x2-window taps (lane-dense blocks).
    o_ref[...] = jnp.maximum(jnp.maximum(a_ref[...], b_ref[...]),
                             jnp.maximum(c_ref[...], d_ref[...]))


# ----------------------------- Pallas wrappers ------------------------------

def pallas_linear(x, w, b, *, relu=False):
    M, K = x.shape
    N = w.shape[1]
    tile_m = _pick_tile(M)
    grid = (M // tile_m,)
    kernel = functools.partial(_matmul_bias_act_kernel, relu=relu)
    cost = pl.CostEstimate(
        flops=2 * M * K * N,
        transcendentals=0,
        bytes_accessed=4 * (M * K + K * N + M * N + N),
    )
    return pl.pallas_call(
        kernel,
        out_shape=jax.ShapeDtypeStruct((M, N), x.dtype),
        grid=grid,
        in_specs=[
            pl.BlockSpec((tile_m, K), lambda i: (i, 0)),   # row-tiled activations
            pl.BlockSpec((K, N), lambda i: (0, 0)),        # weights resident
            pl.BlockSpec((1, N), lambda i: (0, 0)),        # bias resident
        ],
        out_specs=pl.BlockSpec((tile_m, N), lambda i: (i, 0)),
        compiler_params=_compiler_params(),
        cost_estimate=cost,
    )(x, w, b)


def pallas_mlp_head(x, w1, b1, w2, b2):
    M, K = x.shape
    H = w1.shape[1]
    N = w2.shape[1]
    tile_m = _pick_tile(M)
    grid = (M // tile_m,)
    cost = pl.CostEstimate(
        flops=2 * M * (K * H + H * N),
        transcendentals=M * N,
        bytes_accessed=4 * (M * K + K * H + H * N + M * N + H + N),
    )
    return pl.pallas_call(
        _mlp_head_kernel,
        out_shape=jax.ShapeDtypeStruct((M, N), x.dtype),
        grid=grid,
        in_specs=[
            pl.BlockSpec((tile_m, K), lambda i: (i, 0)),
            pl.BlockSpec((K, H), lambda i: (0, 0)),
            pl.BlockSpec((1, H), lambda i: (0, 0)),
            pl.BlockSpec((H, N), lambda i: (0, 0)),
            pl.BlockSpec((1, N), lambda i: (0, 0)),
        ],
        out_specs=pl.BlockSpec((tile_m, N), lambda i: (i, 0)),
        compiler_params=_compiler_params(),
        cost_estimate=cost,
    )(x, w1, b1, w2, b2)


def pallas_maxpool2(x_nhwc):
    # 2x2 max pool, stride 2, NHWC.  The four window taps are strided views
    # built by XLA (glue); each is reshaped (free, row-major) to (B*Hp, Wp*C)
    # so the kernel operates on lane-dense blocks (last dim a multiple of 128).
    B, H, W, C = x_nhwc.shape
    Hp, Wp = H // 2, W // 2
    views = [
        x_nhwc[:, i:2 * Hp:2, j:2 * Wp:2, :].reshape(B * Hp, Wp * C)
        for i in range(2) for j in range(2)
    ]
    M, N = B * Hp, Wp * C
    tile_m = _pick_tile(M)
    grid = (M // tile_m,)
    out = pl.pallas_call(
        _max4_kernel,
        out_shape=jax.ShapeDtypeStruct((M, N), x_nhwc.dtype),
        grid=grid,
        in_specs=[pl.BlockSpec((tile_m, N), lambda i: (i, 0))] * 4,
        out_specs=pl.BlockSpec((tile_m, N), lambda i: (i, 0)),
        compiler_params=_compiler_params(),
    )(*views)
    return out.reshape(B, Hp, Wp, C)


# ------------------------------- model glue ---------------------------------

def _im2col(x_nhwc, k):
    # valid-conv patches, feature order (Cin, kh, kw) to match PyTorch's
    # (Cout, Cin, Kh, Kw).reshape(Cout, -1).
    B, H, W, C = x_nhwc.shape
    Ho, Wo = H - k + 1, W - k + 1
    cols = jnp.stack(
        [x_nhwc[:, i:i + Ho, j:j + Wo, :] for i in range(k) for j in range(k)],
        axis=-1,
    )  # (B, Ho, Wo, C, k*k)
    return cols.reshape(B * Ho * Wo, C * k * k), (B, Ho, Wo)


def init_params(key):
    # PyTorch-layout parameters (same shapes as the nn.Module).
    ks = jax.random.split(key, 8)

    def _w(k, shape, fan_in):
        return jax.random.normal(k, shape, jnp.float32) / jnp.sqrt(fan_in)

    return {
        "conv1_w": _w(ks[0], (32, 1, 5, 5), 1 * 5 * 5),
        "conv1_b": _w(ks[1], (32,), 25.0),
        "conv2_w": _w(ks[2], (64, 32, 5, 5), 32 * 5 * 5),
        "conv2_b": _w(ks[3], (64,), 800.0),
        "fc1_w": _w(ks[4], (128, 1024), 1024.0),
        "fc1_b": _w(ks[5], (128,), 1024.0),
        "fc2_w": _w(ks[6], (10, 128), 128.0),
        "fc2_b": _w(ks[7], (10,), 128.0),
    }


def prepare_params(p, matmul_dtype=jnp.float32):
    """One-time conversion of PyTorch-layout params into kernel layout.

    All transposes happen here (not per forward call).  The torch.flatten
    (NCHW) permutation is folded into fc1's weight so the activation path
    stays in NHWC with a plain row-major flatten.
    """
    w1 = p["conv1_w"].reshape(32, -1).T                       # (25, 32)
    w2 = p["conv2_w"].reshape(64, -1).T                       # (800, 64)
    # fc1_w[n, c*16+h*4+w]  ->  fc1k[h*256+w*64+c, n]
    fc1 = p["fc1_w"].reshape(128, 64, 4, 4).transpose(2, 3, 1, 0).reshape(1024, 128)
    fc2 = p["fc2_w"].T                                        # (128, 10)
    return {
        "conv1_w": w1.astype(matmul_dtype),
        "conv1_b": p["conv1_b"].reshape(1, -1).astype(jnp.float32),
        "conv2_w": w2.astype(matmul_dtype),
        "conv2_b": p["conv2_b"].reshape(1, -1).astype(jnp.float32),
        "fc1_w": fc1.astype(matmul_dtype),
        "fc1_b": p["fc1_b"].reshape(1, -1).astype(jnp.float32),
        "fc2_w": fc2.astype(matmul_dtype),
        "fc2_b": p["fc2_b"].reshape(1, -1).astype(jnp.float32),
    }


def simple_cnn_forward(x_nchw, kp):
    x = jnp.transpose(x_nchw, (0, 2, 3, 1))                   # NCHW -> NHWC (C=1)

    # conv1 (1->32, 5x5, valid) + bias + ReLU as a gridded im2col matmul.
    cols, (B, Ho, Wo) = _im2col(x, 5)
    y = pallas_linear(cols, kp["conv1_w"], kp["conv1_b"], relu=True)
    y = y.reshape(B, Ho, Wo, 32)
    y = pallas_maxpool2(y)                                    # (B, 12, 12, 32)

    # conv2 (32->64, 5x5, valid) + bias + ReLU.
    cols, (B, Ho, Wo) = _im2col(y, 5)
    y = pallas_linear(cols, kp["conv2_w"], kp["conv2_b"], relu=True)
    y = y.reshape(B, Ho, Wo, 64)
    y = pallas_maxpool2(y)                                    # (B, 4, 4, 64)

    # NHWC row-major flatten; the NCHW (torch.flatten) permutation is already
    # folded into kp["fc1_w"], so no activation transpose is needed.
    y = y.reshape(B, 4 * 4 * 64)                              # (B, 1024)

    # fused fc1 + ReLU + fc2 + softmax (F.softmax implicit dim=1 for 2-D).
    return pallas_mlp_head(y, kp["fc1_w"], kp["fc1_b"], kp["fc2_w"], kp["fc2_b"])


# ----------------------------- pure-JAX reference ---------------------------

def reference_forward(x_nchw, p):
    y = jax.lax.conv_general_dilated(
        x_nchw, p["conv1_w"], window_strides=(1, 1), padding="VALID",
        dimension_numbers=("NCHW", "OIHW", "NCHW"))
    y = jnp.maximum(y + p["conv1_b"][None, :, None, None], 0.0)
    y = jax.lax.reduce_window(y, -jnp.inf, jax.lax.max,
                              (1, 1, 2, 2), (1, 1, 2, 2), "VALID")
    y = jax.lax.conv_general_dilated(
        y, p["conv2_w"], window_strides=(1, 1), padding="VALID",
        dimension_numbers=("NCHW", "OIHW", "NCHW"))
    y = jnp.maximum(y + p["conv2_b"][None, :, None, None], 0.0)
    y = jax.lax.reduce_window(y, -jnp.inf, jax.lax.max,
                              (1, 1, 2, 2), (1, 1, 2, 2), "VALID")
    y = y.reshape(y.shape[0], -1)                             # torch.flatten(x, 1)
    y = jnp.maximum(y @ p["fc1_w"].T + p["fc1_b"], 0.0)
    y = y @ p["fc2_w"].T + p["fc2_b"]
    return jax.nn.softmax(y, axis=-1)


if __name__ == "__main__":
    key = jax.random.PRNGKey(0)
    k_x, k_p = jax.random.split(key)
    # Spatial 28x28, 1 channel forced by fc1's 1024 = 64*4*4 input features.
    x = jax.random.normal(k_x, (2, 1, 28, 28), dtype=jnp.float32)

    params = init_params(k_p)                 # PyTorch-layout params
    kparams = prepare_params(params)          # kernel-layout (transposed once)

    fwd = jax.jit(simple_cnn_forward)
    out = jax.block_until_ready(fwd(x, kparams))

    assert out.shape == (2, 10), out.shape
    assert bool(jnp.all(jnp.abs(jnp.sum(out, axis=-1) - 1.0) < 2e-3))

    ref = jax.block_until_ready(reference_forward(x, params))
    max_err = float(jnp.max(jnp.abs(out - ref)))
    assert max_err < 2e-3, max_err

    print("KERNEL_OK")
</pallas_src>

<mosaic_0001>
module attributes {stable_mosaic.version = 11 : i64} {
  func.func @_matmul_bias_act_kernel(%arg0: i32, %arg1: memref<384x25xf32, #tpu.memory_space<vmem>>, %arg2: memref<25x32xf32, #tpu.memory_space<vmem>>, %arg3: memref<1x32xf32, #tpu.memory_space<vmem>>, %arg4: memref<384x32xf32, #tpu.memory_space<vmem>>) attributes {dimension_semantics = [#tpu.dimension_semantics<parallel>], iteration_bounds = array<i64: 3>, scalar_prefetch = 0 : i64, scratch_operands = 0 : i64, tpu.core_type = #tpu.core_type<tc>, window_params = [{transform_indices = @transform_0, window_bounds = array<i64: 384, 25>}, {pipeline_mode = #tpu.pipeline_mode<synchronous>, transform_indices = @transform_1, window_bounds = array<i64: 25, 32>}, {pipeline_mode = #tpu.pipeline_mode<synchronous>, transform_indices = @transform_2, window_bounds = array<i64: 1, 32>}, {transform_indices = @transform_3, window_bounds = array<i64: 384, 32>}]} {
    %c0 = arith.constant 0 : index
    %c0_0 = arith.constant 0 : index
    %0 = vector.load %arg1[%c0, %c0_0] : memref<384x25xf32, #tpu.memory_space<vmem>>, vector<384x25xf32>
    %c0_1 = arith.constant 0 : index
    %c0_2 = arith.constant 0 : index
    %1 = vector.load %arg2[%c0_1, %c0_2] : memref<25x32xf32, #tpu.memory_space<vmem>>, vector<25x32xf32>
    %cst = arith.constant dense<0.000000e+00> : vector<384x32xf32>
    %2 = tpu.matmul %0, %1, %cst {dimension_numbers = #tpu.dot_dimension_numbers<[1], [0], [0], [1], [0, 0, 1, 1], [], []>} : vector<384x25xf32>, vector<25x32xf32>, vector<384x32xf32> -> vector<384x32xf32>
    %c0_3 = arith.constant 0 : index
    %c0_4 = arith.constant 0 : index
    %3 = vector.load %arg3[%c0_3, %c0_4] : memref<1x32xf32, #tpu.memory_space<vmem>>, vector<1x32xf32>
    %4 = vector.broadcast %3 : vector<1x32xf32> to vector<384x32xf32>
    %5 = arith.addf %2, %4 : vector<384x32xf32>
    %cst_5 = arith.constant 0.000000e+00 : f32
    %6 = vector.broadcast %cst_5 : f32 to vector<384x32xf32>
    %7 = arith.maximumf %5, %6 : vector<384x32xf32>
    %c0_6 = arith.constant 0 : index
    %c0_7 = arith.constant 0 : index
    %8 = vector.load %arg4[%c0_6, %c0_7] : memref<384x32xf32, #tpu.memory_space<vmem>>, vector<384x32xf32>
    tpu.vector_store %arg4[%c0_6, %c0_7], %7 {strides = array<i32>} : memref<384x32xf32, #tpu.memory_space<vmem>>, vector<384x32xf32>,
    return
  }
  func.func @transform_0(%arg0: i32) -> (i32, i32) {
    %c0_i32 = arith.constant 0 : i32
    %c0_i32_0 = arith.constant 0 : i32
    return %arg0, %c0_i32 : i32, i32
  }
  func.func @transform_1(%arg0: i32) -> (i32, i32) {
    %c0_i32 = arith.constant 0 : i32
    %c0_i32_0 = arith.constant 0 : i32
    %c0_i32_1 = arith.constant 0 : i32
    return %c0_i32, %c0_i32_0 : i32, i32
  }
  func.func @transform_2(%arg0: i32) -> (i32, i32) {
    %c0_i32 = arith.constant 0 : i32
    %c0_i32_0 = arith.constant 0 : i32
    %c0_i32_1 = arith.constant 0 : i32
    return %c0_i32, %c0_i32_0 : i32, i32
  }
  func.func @transform_3(%arg0: i32) -> (i32, i32) {
    %c0_i32 = arith.constant 0 : i32
    %c0_i32_0 = arith.constant 0 : i32
    return %arg0, %c0_i32 : i32, i32
  }
}

module attributes {stable_mosaic.version = 11 : i64} {
  func.func @_max4_kernel(%arg0: i32, %arg1: memref<24x384xf32, #tpu.memory_space<vmem>>, %arg2: memref<24x384xf32, #tpu.memory_space<vmem>>, %arg3: memref<24x384xf32, #tpu.memory_space<vmem>>, %arg4: memref<24x384xf32, #tpu.memory_space<vmem>>, %arg5: memref<24x384xf32, #tpu.memory_space<vmem>>) attributes {dimension_semantics = [#tpu.dimension_semantics<parallel>], iteration_bounds = array<i64: 1>, scalar_prefetch = 0 : i64, scratch_operands = 0 : i64, tpu.core_type = #tpu.core_type<tc>, window_params = [{transform_indices = @transform_0, window_bounds = array<i64: 24, 384>}, {transform_indices = @transform_1, window_bounds = array<i64: 24, 384>}, {transform_indices = @transform_2, window_bounds = array<i64: 24, 384>}, {transform_indices = @transform_3, window_bounds = array<i64: 24, 384>}, {transform_indices = @transform_4, window_bounds = array<i64: 24, 384>}]} {
    %c0 = arith.constant 0 : index
    %c0_0 = arith.constant 0 : index
    %0 = vector.load %arg1[%c0, %c0_0] : memref<24x384xf32, #tpu.memory_space<vmem>>, vector<24x384xf32>
    %c0_1 = arith.constant 0 : index
    %c0_2 = arith.constant 0 : index
    %1 = vector.load %arg2[%c0_1, %c0_2] : memref<24x384xf32, #tpu.memory_space<vmem>>, vector<24x384xf32>
    %2 = arith.maximumf %0, %1 : vector<24x384xf32>
    %c0_3 = arith.constant 0 : index
    %c0_4 = arith.constant 0 : index
    %3 = vector.load %arg3[%c0_3, %c0_4] : memref<24x384xf32, #tpu.memory_space<vmem>>, vector<24x384xf32>
    %c0_5 = arith.constant 0 : index
    %c0_6 = arith.constant 0 : index
    %4 = vector.load %arg4[%c0_5, %c0_6] : memref<24x384xf32, #tpu.memory_space<vmem>>, vector<24x384xf32>
    %5 = arith.maximumf %3, %4 : vector<24x384xf32>
    %6 = arith.maximumf %2, %5 : vector<24x384xf32>
    %c0_7 = arith.constant 0 : index
    %c0_8 = arith.constant 0 : index
    %7 = vector.load %arg5[%c0_7, %c0_8] : memref<24x384xf32, #tpu.memory_space<vmem>>, vector<24x384xf32>
    tpu.vector_store %arg5[%c0_7, %c0_8], %6 {strides = array<i32>} : memref<24x384xf32, #tpu.memory_space<vmem>>, vector<24x384xf32>,
    return
  }
  func.func @transform_0(%arg0: i32) -> (i32, i32) {
    %c0_i32 = arith.constant 0 : i32
    %c0_i32_0 = arith.constant 0 : i32
    return %arg0, %c0_i32 : i32, i32
  }
  func.func @transform_1(%arg0: i32) -> (i32, i32) {
    %c0_i32 = arith.constant 0 : i32
    %c0_i32_0 = arith.constant 0 : i32
    return %arg0, %c0_i32 : i32, i32
  }
  func.func @transform_2(%arg0: i32) -> (i32, i32) {
    %c0_i32 = arith.constant 0 : i32
    %c0_i32_0 = arith.constant 0 : i32
    return %arg0, %c0_i32 : i32, i32
  }
  func.func @transform_3(%arg0: i32) -> (i32, i32) {
    %c0_i32 = arith.constant 0 : i32
    %c0_i32_0 = arith.constant 0 : i32
    return %arg0, %c0_i32 : i32, i32
  }
  func.func @transform_4(%arg0: i32) -> (i32, i32) {
    %c0_i32 = arith.constant 0 : i32
    %c0_i32_0 = arith.constant 0 : i32
    return %arg0, %c0_i32 : i32, i32
  }
}

module attributes {stable_mosaic.version = 11 : i64} {
  func.func @_matmul_bias_act_kernel(%arg0: i32, %arg1: memref<128x800xf32, #tpu.memory_space<vmem>>, %arg2: memref<800x64xf32, #tpu.memory_space<vmem>>, %arg3: memref<1x64xf32, #tpu.memory_space<vmem>>, %arg4: memref<128x64xf32, #tpu.memory_space<vmem>>) attributes {dimension_semantics = [#tpu.dimension_semantics<parallel>], iteration_bounds = array<i64: 1>, scalar_prefetch = 0 : i64, scratch_operands = 0 : i64, tpu.core_type = #tpu.core_type<tc>, window_params = [{transform_indices = @transform_0, window_bounds = array<i64: 128, 800>}, {pipeline_mode = #tpu.pipeline_mode<synchronous>, transform_indices = @transform_1, window_bounds = array<i64: 800, 64>}, {pipeline_mode = #tpu.pipeline_mode<synchronous>, transform_indices = @transform_2, window_bounds = array<i64: 1, 64>}, {transform_indices = @transform_3, window_bounds = array<i64: 128, 64>}]} {
    %c0 = arith.constant 0 : index
    %c0_0 = arith.constant 0 : index
    %0 = vector.load %arg1[%c0, %c0_0] : memref<128x800xf32, #tpu.memory_space<vmem>>, vector<128x800xf32>
    %c0_1 = arith.constant 0 : index
    %c0_2 = arith.constant 0 : index
    %1 = vector.load %arg2[%c0_1, %c0_2] : memref<800x64xf32, #tpu.memory_space<vmem>>, vector<800x64xf32>
    %cst = arith.constant dense<0.000000e+00> : vector<128x64xf32>
    %2 = tpu.matmul %0, %1, %cst {dimension_numbers = #tpu.dot_dimension_numbers<[1], [0], [0], [1], [0, 0, 1, 1], [], []>} : vector<128x800xf32>, vector<800x64xf32>, vector<128x64xf32> -> vector<128x64xf32>
    %c0_3 = arith.constant 0 : index
    %c0_4 = arith.constant 0 : index
    %3 = vector.load %arg3[%c0_3, %c0_4] : memref<1x64xf32, #tpu.memory_space<vmem>>, vector<1x64xf32>
    %4 = vector.broadcast %3 : vector<1x64xf32> to vector<128x64xf32>
    %5 = arith.addf %2, %4 : vector<128x64xf32>
    %cst_5 = arith.constant 0.000000e+00 : f32
    %6 = vector.broadcast %cst_5 : f32 to vector<128x64xf32>
    %7 = arith.maximumf %5, %6 : vector<128x64xf32>
    %c0_6 = arith.constant 0 : index
    %c0_7 = arith.constant 0 : index
    %8 = vector.load %arg4[%c0_6, %c0_7] : memref<128x64xf32, #tpu.memory_space<vmem>>, vector<128x64xf32>
    tpu.vector_store %arg4[%c0_6, %c0_7], %7 {strides = array<i32>} : memref<128x64xf32, #tpu.memory_space<vmem>>, vector<128x64xf32>,
    return
  }
  func.func @transform_0(%arg0: i32) -> (i32, i32) {
    %c0_i32 = arith.constant 0 : i32
    %c0_i32_0 = arith.constant 0 : i32
    return %arg0, %c0_i32 : i32, i32
  }
  func.func @transform_1(%arg0: i32) -> (i32, i32) {
    %c0_i32 = arith.constant 0 : i32
    %c0_i32_0 = arith.constant 0 : i32
    %c0_i32_1 = arith.constant 0 : i32
    return %c0_i32, %c0_i32_0 : i32, i32
  }
  func.func @transform_2(%arg0: i32) -> (i32, i32) {
    %c0_i32 = arith.constant 0 : i32
    %c0_i32_0 = arith.constant 0 : i32
    %c0_i32_1 = arith.constant 0 : i32
    return %c0_i32, %c0_i32_0 : i32, i32
  }
  func.func @transform_3(%arg0: i32) -> (i32, i32) {
    %c0_i32 = arith.constant 0 : i32
    %c0_i32_0 = arith.constant 0 : i32
    return %arg0, %c0_i32 : i32, i32
  }
}

module attributes {stable_mosaic.version = 11 : i64} {
  func.func @_max4_kernel(%arg0: i32, %arg1: memref<8x256xf32, #tpu.memory_space<vmem>>, %arg2: memref<8x256xf32, #tpu.memory_space<vmem>>, %arg3: memref<8x256xf32, #tpu.memory_space<vmem>>, %arg4: memref<8x256xf32, #tpu.memory_space<vmem>>, %arg5: memref<8x256xf32, #tpu.memory_space<vmem>>) attributes {dimension_semantics = [#tpu.dimension_semantics<parallel>], iteration_bounds = array<i64: 1>, scalar_prefetch = 0 : i64, scratch_operands = 0 : i64, tpu.core_type = #tpu.core_type<tc>, window_params = [{transform_indices = @transform_0, window_bounds = array<i64: 8, 256>}, {transform_indices = @transform_1, window_bounds = array<i64: 8, 256>}, {transform_indices = @transform_2, window_bounds = array<i64: 8, 256>}, {transform_indices = @transform_3, window_bounds = array<i64: 8, 256>}, {transform_indices = @transform_4, window_bounds = array<i64: 8, 256>}]} {
    %c0 = arith.constant 0 : index
    %c0_0 = arith.constant 0 : index
    %0 = vector.load %arg1[%c0, %c0_0] : memref<8x256xf32, #tpu.memory_space<vmem>>, vector<8x256xf32>
    %c0_1 = arith.constant 0 : index
    %c0_2 = arith.constant 0 : index
    %1 = vector.load %arg2[%c0_1, %c0_2] : memref<8x256xf32, #tpu.memory_space<vmem>>, vector<8x256xf32>
    %2 = arith.maximumf %0, %1 : vector<8x256xf32>
    %c0_3 = arith.constant 0 : index
    %c0_4 = arith.constant 0 : index
    %3 = vector.load %arg3[%c0_3, %c0_4] : memref<8x256xf32, #tpu.memory_space<vmem>>, vector<8x256xf32>
    %c0_5 = arith.constant 0 : index
    %c0_6 = arith.constant 0 : index
    %4 = vector.load %arg4[%c0_5, %c0_6] : memref<8x256xf32, #tpu.memory_space<vmem>>, vector<8x256xf32>
    %5 = arith.maximumf %3, %4 : vector<8x256xf32>
    %6 = arith.maximumf %2, %5 : vector<8x256xf32>
    %c0_7 = arith.constant 0 : index
    %c0_8 = arith.constant 0 : index
    %7 = vector.load %arg5[%c0_7, %c0_8] : memref<8x256xf32, #tpu.memory_space<vmem>>, vector<8x256xf32>
    tpu.vector_store %arg5[%c0_7, %c0_8], %6 {strides = array<i32>} : memref<8x256xf32, #tpu.memory_space<vmem>>, vector<8x256xf32>,
    return
  }
  func.func @transform_0(%arg0: i32) -> (i32, i32) {
    %c0_i32 = arith.constant 0 : i32
    %c0_i32_0 = arith.constant 0 : i32
    return %arg0, %c0_i32 : i32, i32
  }
  func.func @transform_1(%arg0: i32) -> (i32, i32) {
    %c0_i32 = arith.constant 0 : i32
    %c0_i32_0 = arith.constant 0 : i32
    return %arg0, %c0_i32 : i32, i32
  }
  func.func @transform_2(%arg0: i32) -> (i32, i32) {
    %c0_i32 = arith.constant 0 : i32
    %c0_i32_0 = arith.constant 0 : i32
    return %arg0, %c0_i32 : i32, i32
  }
  func.func @transform_3(%arg0: i32) -> (i32, i32) {
    %c0_i32 = arith.constant 0 : i32
    %c0_i32_0 = arith.constant 0 : i32
    return %arg0, %c0_i32 : i32, i32
  }
  func.func @transform_4(%arg0: i32) -> (i32, i32) {
    %c0_i32 = arith.constant 0 : i32
    %c0_i32_0 = arith.constant 0 : i32
    return %arg0, %c0_i32 : i32, i32
  }
}

module attributes {stable_mosaic.version = 11 : i64} {
  func.func @_mlp_head_kernel(%arg0: i32, %arg1: memref<2x1024xf32, #tpu.memory_space<vmem>>, %arg2: memref<1024x128xf32, #tpu.memory_space<vmem>>, %arg3: memref<1x128xf32, #tpu.memory_space<vmem>>, %arg4: memref<128x10xf32, #tpu.memory_space<vmem>>, %arg5: memref<1x10xf32, #tpu.memory_space<vmem>>, %arg6: memref<2x10xf32, #tpu.memory_space<vmem>>) attributes {dimension_semantics = [#tpu.dimension_semantics<parallel>], iteration_bounds = array<i64: 1>, scalar_prefetch = 0 : i64, scratch_operands = 0 : i64, tpu.core_type = #tpu.core_type<tc>, window_params = [{transform_indices = @transform_0, window_bounds = array<i64: 2, 1024>}, {pipeline_mode = #tpu.pipeline_mode<synchronous>, transform_indices = @transform_1, window_bounds = array<i64: 1024, 128>}, {pipeline_mode = #tpu.pipeline_mode<synchronous>, transform_indices = @transform_2, window_bounds = array<i64: 1, 128>}, {pipeline_mode = #tpu.pipeline_mode<synchronous>, transform_indices = @transform_3, window_bounds = array<i64: 128, 10>}, {pipeline_mode = #tpu.pipeline_mode<synchronous>, transform_indices = @transform_4, window_bounds = array<i64: 1, 10>}, {transform_indices = @transform_5, window_bounds = array<i64: 2, 10>}]} {
    %c0 = arith.constant 0 : index
    %c0_0 = arith.constant 0 : index
    %0 = vector.load %arg1[%c0, %c0_0] : memref<2x1024xf32, #tpu.memory_space<vmem>>, vector<2x1024xf32>
    %c0_1 = arith.constant 0 : index
    %c0_2 = arith.constant 0 : index
    %1 = vector.load %arg2[%c0_1, %c0_2] : memref<1024x128xf32, #tpu.memory_space<vmem>>, vector<1024x128xf32>
    %cst = arith.constant dense<0.000000e+00> : vector<2x128xf32>
    %2 = tpu.matmul %0, %1, %cst {dimension_numbers = #tpu.dot_dimension_numbers<[1], [0], [0], [1], [0, 0, 1, 1], [], []>} : vector<2x1024xf32>, vector<1024x128xf32>, vector<2x128xf32> -> vector<2x128xf32>
    %c0_3 = arith.constant 0 : index
    %c0_4 = arith.constant 0 : index
    %3 = vector.load %arg3[%c0_3, %c0_4] : memref<1x128xf32, #tpu.memory_space<vmem>>, vector<1x128xf32>
    %4 = vector.broadcast %3 : vector<1x128xf32> to vector<2x128xf32>
    %5 = arith.addf %2, %4 : vector<2x128xf32>
    %cst_5 = arith.constant 0.000000e+00 : f32
    %6 = vector.broadcast %cst_5 : f32 to vector<2x128xf32>
    %7 = arith.maximumf %5, %6 : vector<2x128xf32>
    %c0_6 = arith.constant 0 : index
    %c0_7 = arith.constant 0 : index
    %8 = vector.load %arg4[%c0_6, %c0_7] : memref<128x10xf32, #tpu.memory_space<vmem>>, vector<128x10xf32>
    %cst_8 = arith.constant dense<0.000000e+00> : vector<2x10xf32>
    %9 = tpu.matmul %7, %8, %cst_8 {dimension_numbers = #tpu.dot_dimension_numbers<[1], [0], [0], [1], [0, 0, 1, 1], [], []>} : vector<2x128xf32>, vector<128x10xf32>, vector<2x10xf32> -> vector<2x10xf32>
    %c0_9 = arith.constant 0 : index
    %c0_10 = arith.constant 0 : index
    %10 = vector.load %arg5[%c0_9, %c0_10] : memref<1x10xf32, #tpu.memory_space<vmem>>, vector<1x10xf32>
    %11 = vector.broadcast %10 : vector<1x10xf32> to vector<2x10xf32>
    %12 = arith.addf %9, %11 : vector<2x10xf32>
    %cst_11 = arith.constant dense<0xFF800000> : vector<2xf32>
    %13 = vector.multi_reduction <maximumf>, %12, %cst_11 [1] : vector<2x10xf32> to vector<2xf32>
    %14 = vector.shape_cast %13 : vector<2xf32> to vector<2x1xf32>
    %15 = vector.broadcast %14 : vector<2x1xf32> to vector<2x10xf32>
    %16 = arith.subf %12, %15 : vector<2x10xf32>
    %17 = math.exp %16 : vector<2x10xf32>
    %cst_12 = arith.constant dense<0.000000e+00> : vector<2xf32>
    %18 = vector.multi_reduction <add>, %17, %cst_12 [1] : vector<2x10xf32> to vector<2xf32>
    %19 = vector.shape_cast %18 : vector<2xf32> to vector<2x1xf32>
    %20 = vector.broadcast %19 : vector<2x1xf32> to vector<2x10xf32>
    %21 = arith.divf %17, %20 : vector<2x10xf32>
    %c0_13 = arith.constant 0 : index
    %c0_14 = arith.constant 0 : index
    %22 = vector.load %arg6[%c0_13, %c0_14] : memref<2x10xf32, #tpu.memory_space<vmem>>, vector<2x10xf32>
    tpu.vector_store %arg6[%c0_13, %c0_14], %21 {strides = array<i32>} : memref<2x10xf32, #tpu.memory_space<vmem>>, vector<2x10xf32>,
    return
  }
  func.func @transform_0(%arg0: i32) -> (i32, i32) {
    %c0_i32 = arith.constant 0 : i32
    %c0_i32_0 = arith.constant 0 : i32
    return %arg0, %c0_i32 : i32, i32
  }
  func.func @transform_1(%arg0: i32) -> (i32, i32) {
    %c0_i32 = arith.constant 0 : i32
    %c0_i32_0 = arith.constant 0 : i32
    %c0_i32_1 = arith.constant 0 : i32
    return %c0_i32, %c0_i32_0 : i32, i32
  }
  func.func @transform_2(%arg0: i32) -> (i32, i32) {
    %c0_i32 = arith.constant 0 : i32
    %c0_i32_0 = arith.constant 0 : i32
    %c0_i32_1 = arith.constant 0 : i32
    return %c0_i32, %c0_i32_0 : i32, i32
  }
  func.func @transform_3(%arg0: i32) -> (i32, i32) {
    %c0_i32 = arith.constant 0 : i32
    %c0_i32_0 = arith.constant 0 : i32
    %c0_i32_1 = arith.constant 0 : i32
    return %c0_i32, %c0_i32_0 : i32, i32
  }
  func.func @transform_4(%arg0: i32) -> (i32, i32) {
    %c0_i32 = arith.constant 0 : i32
    %c0_i32_0 = arith.constant 0 : i32
    %c0_i32_1 = arith.constant 0 : i32
    return %c0_i32, %c0_i32_0 : i32, i32
  }
  func.func @transform_5(%arg0: i32) -> (i32, i32) {
    %c0_i32 = arith.constant 0 : i32
    %c0_i32_0 = arith.constant 0 : i32
    return %arg0, %c0_i32 : i32, i32
  }
}

</mosaic_0001>

<bundles_post_ra>
// kernel: simple_cnn_forward.5
= control target key start
LH: loop header
LB: loop body
LE: loop exit
PB: predicated region body
PF: predicated region fallthrough
CT: control target
= control target key end

     0   :  { %s800_s12 = smov 0   ;;  %s1085_s0 = inlined_call_operand.vmem [shape: f32[1152,25], index: 0, kind: input, shape index: {}]   ;;  %s1086_s1 = inlined_call_operand.vmem [shape: f32[25,32], index: 1, kind: input, shape index: {}]   ;;  %s1087_s2 = inlined_call_operand.vmem [shape: f32[1,32], index: 2, kind: input, shape index: {}]   ;;  %s1088_s3 = inlined_call_operand.vmem [shape: f32[1152,32], index: 3, kind: output, shape index: {}]  }
   0x1 LB: > { %s693_s13 = sadd.s32 4294967295, %s778_s12   ;;  %p697_p0 = scmp.ge.s32.totalorder %s778_s12, 1  ;;  %s778_s12 = sphi %s800_s12, %s13_s12  }
   0x2   : > { %p138_p1 = scmp.lt.s32.totalorder %s778_s12, 4 }
   0x4   : > { %p139_p2 = pnand %p697_p0, %p138_p1 }
   0x5   : > { %s162_s18 = smul.u32 (!%p139_p2), 48, %s693_s13 }
   0x6   : > { %142 = sbr.rel (%p139_p2) target bundleno = 246 (0xf6), region = 32 }
   0x7   : > { %p163_p3 = scmp.lt.s32.totalorder (!%p139_p2), %s162_s18, 143 }
   0xb   : > { %v225_v0 = vld [vmem:[%s1086_s1 + $0x18] sm:$0x1]  ;;  %vm375_vm0 = vcmask 1040384   ;;  %v224_v1 = vld [vmem:[%s1086_s1 + $0x10] sm:$0xff]  ;;  %v223_v2 = vld [vmem:[%s1086_s1 + $0x8] sm:$0xff]  ;;  %s1090_s18 = smov (!%p163_p3, %s162_s18), 143 }
   0xc   : > { %752 = vmatpush.msk.msra.mxu2 %vm375_vm0, %v225_v0  ;;  %753 = vmatpush.msk.msra.mxu3 %vm375_vm0, %v225_v0  ;;  %v222_v3 = vld [vmem:[%s1086_s1] sm:$0xff]  ;;  %s698_s23 = sshll.u32 %s1090_s18, 3  ;;  %vm230_vm1 = vcmask 203776   ;;  %vm588_vm2 = vcmask 261120  }
   0xd   : > { %700 = vmatpush.msk.msra.mxu0 %vm375_vm0, %v225_v0  ;;  %751 = vmatpush.msk.msra.mxu1 %vm375_vm0, %v225_v0  ;;  %s828_s26 = scalar_lea.vmem %s1085_s0, %s698_s23  ;;  %v929_v52 = vld [vmem:[%s1087_s2] ss:$0 sm:$0xff]  ;;  %s938_s4 = scalar_lea.vmem %s1088_s3, %s698_s23 }
   0xe   : > { %755 = vmatpush.msra.mxu2 %v224_v1  ;;  %756 = vmatpush.msra.mxu3 %v224_v1  ;;  %v198_v4 = vld [vmem:[%s828_s26 + $0xc0] sm:$0xff]  ;;  %v199_v8 = vld [vmem:[%s828_s26 + $0xc8] sm:$0xff]  ;;  %v200_v12 = vld [vmem:[%s828_s26 + $0xd0] sm:$0xff] }
   0xf   : > { %392 = vmatpush.msra.mxu0 %v224_v1  ;;  %754 = vmatpush.msra.mxu1 %v224_v1  ;;  %v210_v5 = vld [vmem:[%s828_s26 + $0x120] sm:$0xff]  ;;  %v211_v9 = vld [vmem:[%s828_s26 + $0x128] sm:$0xff]  ;;  %v212_v13 = vld [vmem:[%s828_s26 + $0x130] sm:$0xff] }
  0x10   : > { %758 = vmatpush.msra.mxu2 %v223_v2  ;;  %759 = vmatpush.msra.mxu3 %v223_v2  ;;  %v174_v6 = vld [vmem:[%s828_s26] sm:$0xff]  ;;  %v175_v10 = vld [vmem:[%s828_s26 + $0x8] sm:$0xff]  ;;  %v176_v14 = vld [vmem:[%s828_s26 + $0x10] sm:$0xff] }
  0x11   : > { %393 = vmatpush.msra.mxu0 %v223_v2  ;;  %757 = vmatpush.msra.mxu1 %v223_v2  ;;  %v186_v7 = vld [vmem:[%s828_s26 + $0x60] sm:$0xff]  ;;  %v187_v11 = vld [vmem:[%s828_s26 + $0x68] sm:$0xff]  ;;  %v188_v15 = vld [vmem:[%s828_s26 + $0x70] sm:$0xff] }
  0x12   : > { %761 = vmatpush.msra.mxu2 %v222_v3  ;;  %762 = vmatpush.msra.mxu3 %v222_v3  ;;  %v201_v16 = vld [vmem:[%s828_s26 + $0xd8] sm:$0xff]  ;;  %v202_v20 = vld [vmem:[%s828_s26 + $0xe0] sm:$0xff]  ;;  %v203_v24 = vld [vmem:[%s828_s26 + $0xe8] sm:$0xff] }
  0x13   : > { %394 = vmatpush.msra.mxu0 %v222_v3  ;;  %760 = vmatpush.msra.mxu1 %v222_v3  ;;  %v213_v17 = vld [vmem:[%s828_s26 + $0x138] sm:$0xff]  ;;  %v214_v21 = vld [vmem:[%s828_s26 + $0x140] sm:$0xff]  ;;  %v215_v25 = vld [vmem:[%s828_s26 + $0x148] sm:$0xff] }
  0x14   : > { %725 = vmatmul.msk.f32.vlgmr.msra.gmra.mxu2 %vm230_vm1, %v198_v4  ;;  %737 = vmatmul.msk.f32.vlgmr.msra.gmra.mxu3 %vm230_vm1, %v210_v5  ;;  %v177_v18 = vld [vmem:[%s828_s26 + $0x18] sm:$0xff]  ;;  %v178_v22 = vld [vmem:[%s828_s26 + $0x20] sm:$0xff]  ;;  %v179_v26 = vld [vmem:[%s828_s26 + $0x28] sm:$0xff] }
  0x15   : > { %701 = vmatmul.msk.f32.vlgmr.msra.gmra.mxu0 %vm230_vm1, %v174_v6  ;;  %713 = vmatmul.msk.f32.vlgmr.msra.gmra.mxu1 %vm230_vm1, %v186_v7  ;;  %v189_v19 = vld [vmem:[%s828_s26 + $0x78] sm:$0xff]  ;;  %v190_v23 = vld [vmem:[%s828_s26 + $0x80] sm:$0xff]  ;;  %v191_v27 = vld [vmem:[%s828_s26 + $0x88] sm:$0xff] }
  0x16   : > { %v204_v28 = vld [vmem:[%s828_s26 + $0xf0] sm:$0xff]  ;;  %v205_v32 = vld [vmem:[%s828_s26 + $0xf8] sm:$0xff]  ;;  %v206_v36 = vld [vmem:[%s828_s26 + $0x100] sm:$0xff] }
  0x17   : > { %v216_v29 = vld [vmem:[%s828_s26 + $0x150] sm:$0xff]  ;;  %v217_v33 = vld [vmem:[%s828_s26 + $0x158] sm:$0xff]  ;;  %v218_v37 = vld [vmem:[%s828_s26 + $0x160] sm:$0xff] }
  0x18   : > { %v180_v30 = vld [vmem:[%s828_s26 + $0x30] sm:$0xff]  ;;  %v181_v34 = vld [vmem:[%s828_s26 + $0x38] sm:$0xff]  ;;  %v182_v38 = vld [vmem:[%s828_s26 + $0x40] sm:$0xff] }
  0x19   : > { %v192_v31 = vld [vmem:[%s828_s26 + $0x90] sm:$0xff]  ;;  %v193_v35 = vld [vmem:[%s828_s26 + $0x98] sm:$0xff]  ;;  %v194_v39 = vld [vmem:[%s828_s26 + $0xa0] sm:$0xff] }
  0x1a   : > { %v207_v40 = vld [vmem:[%s828_s26 + $0x108] sm:$0xff]  ;;  %v208_v44 = vld [vmem:[%s828_s26 + $0x110] sm:$0xff]  ;;  %v209_v48 = vld [vmem:[%s828_s26 + $0x118] sm:$0xff] }
  0x1b   : > { %v219_v41 = vld [vmem:[%s828_s26 + $0x168] sm:$0xff]  ;;  %v220_v45 = vld [vmem:[%s828_s26 + $0x170] sm:$0xff]  ;;  %v221_v49 = vld [vmem:[%s828_s26 + $0x178] sm:$0xff] }
  0x1c   : > { %726 = vmatmul.msk.f32.gmra.mxu2 %vm230_vm1, %v199_v8  ;;  %738 = vmatmul.msk.f32.gmra.mxu3 %vm230_vm1, %v211_v9  ;;  %v183_v42 = vld [vmem:[%s828_s26 + $0x48] sm:$0xff]  ;;  %v184_v46 = vld [vmem:[%s828_s26 + $0x50] sm:$0xff]  ;;  %v185_v50 = vld [vmem:[%s828_s26 + $0x58] sm:$0xff] }
  0x1d   : > { %702 = vmatmul.msk.f32.gmra.mxu0 %vm230_vm1, %v175_v10  ;;  %714 = vmatmul.msk.f32.gmra.mxu1 %vm230_vm1, %v187_v11  ;;  %v195_v43 = vld [vmem:[%s828_s26 + $0xa8] sm:$0xff]  ;;  %v196_v47 = vld [vmem:[%s828_s26 + $0xb0] sm:$0xff]  ;;  %v197_v51 = vld [vmem:[%s828_s26 + $0xb8] sm:$0xff] }
  0x24   : > { %727 = vmatmul.msk.f32.gmra.mxu2 %vm230_vm1, %v200_v12  ;;  %739 = vmatmul.msk.f32.gmra.mxu3 %vm230_vm1, %v212_v13 }
  0x25   : > { %703 = vmatmul.msk.f32.gmra.mxu0 %vm230_vm1, %v176_v14  ;;  %715 = vmatmul.msk.f32.gmra.mxu1 %vm230_vm1, %v188_v15 }
  0x2c   : > { %728 = vmatmul.msk.f32.gmra.mxu2 %vm230_vm1, %v201_v16  ;;  %740 = vmatmul.msk.f32.gmra.mxu3 %vm230_vm1, %v213_v17 }
  0x2d   : > { %704 = vmatmul.msk.f32.gmra.mxu0 %vm230_vm1, %v177_v18  ;;  %716 = vmatmul.msk.f32.gmra.mxu1 %vm230_vm1, %v189_v19 }
  0x34   : > { %729 = vmatmul.msk.f32.gmra.mxu2 %vm230_vm1, %v202_v20  ;;  %741 = vmatmul.msk.f32.gmra.mxu3 %vm230_vm1, %v214_v21 }
  0x35   : > { %705 = vmatmul.msk.f32.gmra.mxu0 %vm230_vm1, %v178_v22  ;;  %717 = vmatmul.msk.f32.gmra.mxu1 %vm230_vm1, %v190_v23 }
  0x3c   : > { %730 = vmatmul.msk.f32.gmra.mxu2 %vm230_vm1, %v203_v24  ;;  %742 = vmatmul.msk.f32.gmra.mxu3 %vm230_vm1, %v215_v25 }
  0x3d   : > { %706 = vmatmul.msk.f32.gmra.mxu0 %vm230_vm1, %v179_v26  ;;  %718 = vmatmul.msk.f32.gmra.mxu1 %vm230_vm1, %v191_v27 }
  0x44   : > { %731 = vmatmul.msk.f32.gmra.mxu2 %vm230_vm1, %v204_v28  ;;  %743 = vmatmul.msk.f32.gmra.mxu3 %vm230_vm1, %v216_v29 }
  0x45   : > { %707 = vmatmul.msk.f32.gmra.mxu0 %vm230_vm1, %v180_v30  ;;  %719 = vmatmul.msk.f32.gmra.mxu1 %vm230_vm1, %v192_v31 }
  0x4c   : > { %732 = vmatmul.msk.f32.gmra.mxu2 %vm230_vm1, %v205_v32  ;;  %744 = vmatmul.msk.f32.gmra.mxu3 %vm230_vm1, %v217_v33 }
  0x4d   : > { %708 = vmatmul.msk.f32.gmra.mxu0 %vm230_vm1, %v181_v34  ;;  %720 = vmatmul.msk.f32.gmra.mxu1 %vm230_vm1, %v193_v35 }
  0x54   : > { %733 = vmatmul.msk.f32.gmra.mxu2 %vm230_vm1, %v206_v36  ;;  %745 = vmatmul.msk.f32.gmra.mxu3 %vm230_vm1, %v218_v37 }
  0x55   : > { %709 = vmatmul.msk.f32.gmra.mxu0 %vm230_vm1, %v182_v38  ;;  %721 = vmatmul.msk.f32.gmra.mxu1 %vm230_vm1, %v194_v39 }
  0x5c   : > { %734 = vmatmul.msk.f32.gmra.mxu2 %vm230_vm1, %v207_v40  ;;  %746 = vmatmul.msk.f32.gmra.mxu3 %vm230_vm1, %v219_v41 }
  0x5d   : > { %710 = vmatmul.msk.f32.gmra.mxu0 %vm230_vm1, %v183_v42  ;;  %722 = vmatmul.msk.f32.gmra.mxu1 %vm230_vm1, %v195_v43 }
  0x64   : > { %735 = vmatmul.msk.f32.gmra.mxu2 %vm230_vm1, %v208_v44  ;;  %747 = vmatmul.msk.f32.gmra.mxu3 %vm230_vm1, %v220_v45 }
  0x65   : > { %711 = vmatmul.msk.f32.gmra.mxu0 %vm230_vm1, %v184_v46  ;;  %723 = vmatmul.msk.f32.gmra.mxu1 %vm230_vm1, %v196_v47 }
  0x6c   : > { %736 = vmatmul.msk.f32.gmra.mxu2 %vm230_vm1, %v209_v48  ;;  %748 = vmatmul.msk.f32.gmra.mxu3 %vm230_vm1, %v221_v49 }
  0x6d   : > { %712 = vmatmul.msk.f32.gmra.mxu0 %vm230_vm1, %v185_v50  ;;  %724 = vmatmul.msk.f32.gmra.mxu1 %vm230_vm1, %v197_v51 }
  0x92   : > { %v396_v53 = vpop.f32.mrf.mxu0  ;;  %v432_v54 = vpop.f32.mrf.mxu1 }
  0x93   : > { %v397_v55 = vadd.f32 %v929_v52, %v396_v53  ;;  %v433_v56 = vadd.f32 %v929_v52, %v432_v54 }
  0x95   : > { %v540_v57 = vmax.f32 %v397_v55, 0.0  ;;  %v552_v58 = vmax.f32 %v433_v56, 0.0 }
  0x97   : > { %589 = vst.msk [vmem:[%s938_s4] sm:$0xff] %vm588_vm2, %v540_v57  ;;  %v468_v59 = vpop.f32.mrf.mxu2  ;;  %v504_v60 = vpop.f32.mrf.mxu3 }
  0x98   : > { %601 = vst.msk [vmem:[%s938_s4 + $0x60] sm:$0xff] %vm588_vm2, %v552_v58  ;;  %v469_v61 = vadd.f32 %v929_v52, %v468_v59  ;;  %v505_v62 = vadd.f32 %v929_v52, %v504_v60 }
  0x9a   : > { %v564_v63 = vmax.f32 %v469_v61, 0.0  ;;  %v576_v0 = vmax.f32 %v505_v62, 0.0  ;;  %v399_v1 = vpop.f32.mrf.mxu0  ;;  %v435_v2 = vpop.f32.mrf.mxu1 }
  0x9b   : > { %v400_v3 = vadd.f32 %v929_v52, %v399_v1  ;;  %v436_v4 = vadd.f32 %v929_v52, %v435_v2 }
  0x9c   : > { %613 = vst.msk [vmem:[%s938_s4 + $0xc0] sm:$0xff] %vm588_vm2, %v564_v63 }
  0x9d   : > { %625 = vst.msk [vmem:[%s938_s4 + $0x120] sm:$0xff] %vm588_vm2, %v576_v0  ;;  %v541_v5 = vmax.f32 %v400_v3, 0.0  ;;  %v553_v6 = vmax.f32 %v436_v4, 0.0 }
  0x9f   : > { %590 = vst.msk [vmem:[%s938_s4 + $0x8] sm:$0xff] %vm588_vm2, %v541_v5  ;;  %v471_v7 = vpop.f32.mrf.mxu2  ;;  %v507_v8 = vpop.f32.mrf.mxu3 }
  0xa0   : > { %602 = vst.msk [vmem:[%s938_s4 + $0x68] sm:$0xff] %vm588_vm2, %v553_v6  ;;  %v472_v9 = vadd.f32 %v929_v52, %v471_v7  ;;  %v508_v10 = vadd.f32 %v929_v52, %v507_v8 }
  0xa2   : > { %v565_v11 = vmax.f32 %v472_v9, 0.0  ;;  %v577_v12 = vmax.f32 %v508_v10, 0.0  ;;  %v402_v13 = vpop.f32.mrf.mxu0  ;;  %v438_v14 = vpop.f32.mrf.mxu1 }
  0xa3   : > { %v403_v15 = vadd.f32 %v929_v52, %v402_v13  ;;  %v439_v16 = vadd.f32 %v929_v52, %v438_v14 }
  0xa4   : > { %614 = vst.msk [vmem:[%s938_s4 + $0xc8] sm:$0xff] %vm588_vm2, %v565_v11 }
  0xa5   : > { %626 = vst.msk [vmem:[%s938_s4 + $0x128] sm:$0xff] %vm588_vm2, %v577_v12  ;;  %v542_v17 = vmax.f32 %v403_v15, 0.0  ;;  %v554_v18 = vmax.f32 %v439_v16, 0.0 }
  0xa7   : > { %591 = vst.msk [vmem:[%s938_s4 + $0x10] sm:$0xff] %vm588_vm2, %v542_v17  ;;  %v474_v19 = vpop.f32.mrf.mxu2  ;;  %v510_v20 = vpop.f32.mrf.mxu3 }
  0xa8   : > { %603 = vst.msk [vmem:[%s938_s4 + $0x70] sm:$0xff] %vm588_vm2, %v554_v18  ;;  %v475_v21 = vadd.f32 %v929_v52, %v474_v19  ;;  %v511_v22 = vadd.f32 %v929_v52, %v510_v20 }
  0xaa   : > { %v566_v23 = vmax.f32 %v475_v21, 0.0  ;;  %v578_v24 = vmax.f32 %v511_v22, 0.0  ;;  %v405_v25 = vpop.f32.mrf.mxu0  ;;  %v441_v26 = vpop.f32.mrf.mxu1 }
  0xab   : > { %v406_v27 = vadd.f32 %v929_v52, %v405_v25  ;;  %v442_v28 = vadd.f32 %v929_v52, %v441_v26 }
  0xac   : > { %615 = vst.msk [vmem:[%s938_s4 + $0xd0] sm:$0xff] %vm588_vm2, %v566_v23 }
  0xad   : > { %627 = vst.msk [vmem:[%s938_s4 + $0x130] sm:$0xff] %vm588_vm2, %v578_v24  ;;  %v543_v29 = vmax.f32 %v406_v27, 0.0  ;;  %v555_v30 = vmax.f32 %v442_v28, 0.0 }
  0xaf   : > { %592 = vst.msk [vmem:[%s938_s4 + $0x18] sm:$0xff] %vm588_vm2, %v543_v29  ;;  %v477_v31 = vpop.f32.mrf.mxu2  ;;  %v513_v32 = vpop.f32.mrf.mxu3 }
  0xb0   : > { %604 = vst.msk [vmem:[%s938_s4 + $0x78] sm:$0xff] %vm588_vm2, %v555_v30  ;;  %v478_v33 = vadd.f32 %v929_v52, %v477_v31  ;;  %v514_v34 = vadd.f32 %v929_v52, %v513_v32 }
  0xb2   : > { %v567_v35 = vmax.f32 %v478_v33, 0.0  ;;  %v579_v36 = vmax.f32 %v514_v34, 0.0  ;;  %v408_v37 = vpop.f32.mrf.mxu0  ;;  %v444_v38 = vpop.f32.mrf.mxu1 }
  0xb3   : > { %v409_v39 = vadd.f32 %v929_v52, %v408_v37  ;;  %v445_v40 = vadd.f32 %v929_v52, %v444_v38 }
  0xb4   : > { %616 = vst.msk [vmem:[%s938_s4 + $0xd8] sm:$0xff] %vm588_vm2, %v567_v35 }
  0xb5   : > { %628 = vst.msk [vmem:[%s938_s4 + $0x138] sm:$0xff] %vm588_vm2, %v579_v36  ;;  %v544_v41 = vmax.f32 %v409_v39, 0.0  ;;  %v556_v42 = vmax.f32 %v445_v40, 0.0 }
  0xb7   : > { %593 = vst.msk [vmem:[%s938_s4 + $0x20] sm:$0xff] %vm588_vm2, %v544_v41  ;;  %v480_v43 = vpop.f32.mrf.mxu2  ;;  %v516_v44 = vpop.f32.mrf.mxu3 }
  0xb8   : > { %605 = vst.msk [vmem:[%s938_s4 + $0x80] sm:$0xff] %vm588_vm2, %v556_v42  ;;  %v481_v45 = vadd.f32 %v929_v52, %v480_v43  ;;  %v517_v46 = vadd.f32 %v929_v52, %v516_v44 }
  0xba   : > { %v568_v47 = vmax.f32 %v481_v45, 0.0  ;;  %v580_v48 = vmax.f32 %v517_v46, 0.0  ;;  %v411_v49 = vpop.f32.mrf.mxu0  ;;  %v447_v50 = vpop.f32.mrf.mxu1 }
  0xbb   : > { %v412_v51 = vadd.f32 %v929_v52, %v411_v49  ;;  %v448_v53 = vadd.f32 %v929_v52, %v447_v50 }
  0xbc   : > { %617 = vst.msk [vmem:[%s938_s4 + $0xe0] sm:$0xff] %vm588_vm2, %v568_v47 }
  0xbd   : > { %629 = vst.msk [vmem:[%s938_s4 + $0x140] sm:$0xff] %vm588_vm2, %v580_v48  ;;  %v545_v54 = vmax.f32 %v412_v51, 0.0  ;;  %v557_v55 = vmax.f32 %v448_v53, 0.0 }
  0xbf   : > { %594 = vst.msk [vmem:[%s938_s4 + $0x28] sm:$0xff] %vm588_vm2, %v545_v54  ;;  %v483_v56 = vpop.f32.mrf.mxu2  ;;  %v519_v57 = vpop.f32.mrf.mxu3 }
  0xc0   : > { %606 = vst.msk [vmem:[%s938_s4 + $0x88] sm:$0xff] %vm588_vm2, %v557_v55  ;;  %v484_v58 = vadd.f32 %v929_v52, %v483_v56  ;;  %v520_v59 = vadd.f32 %v929_v52, %v519_v57 }
  0xc2   : > { %v569_v60 = vmax.f32 %v484_v58, 0.0  ;;  %v581_v61 = vmax.f32 %v520_v59, 0.0  ;;  %v414_v62 = vpop.f32.mrf.mxu0  ;;  %v450_v63 = vpop.f32.mrf.mxu1 }
  0xc3   : > { %v415_v0 = vadd.f32 %v929_v52, %v414_v62  ;;  %v451_v1 = vadd.f32 %v929_v52, %v450_v63 }
  0xc4   : > { %618 = vst.msk [vmem:[%s938_s4 + $0xe8] sm:$0xff] %vm588_vm2, %v569_v60 }
  0xc5   : > { %630 = vst.msk [vmem:[%s938_s4 + $0x148] sm:$0xff] %vm588_vm2, %v581_v61  ;;  %v546_v2 = vmax.f32 %v415_v0, 0.0  ;;  %v558_v3 = vmax.f32 %v451_v1, 0.0 }
  0xc7   : > { %595 = vst.msk [vmem:[%s938_s4 + $0x30] sm:$0xff] %vm588_vm2, %v546_v2  ;;  %v486_v4 = vpop.f32.mrf.mxu2  ;;  %v522_v5 = vpop.f32.mrf.mxu3 }
  0xc8   : > { %607 = vst.msk [vmem:[%s938_s4 + $0x90] sm:$0xff] %vm588_vm2, %v558_v3  ;;  %v487_v6 = vadd.f32 %v929_v52, %v486_v4  ;;  %v523_v7 = vadd.f32 %v929_v52, %v522_v5 }
  0xca   : > { %v570_v8 = vmax.f32 %v487_v6, 0.0  ;;  %v582_v9 = vmax.f32 %v523_v7, 0.0  ;;  %v417_v10 = vpop.f32.mrf.mxu0  ;;  %v453_v11 = vpop.f32.mrf.mxu1 }
  0xcb   : > { %v418_v12 = vadd.f32 %v929_v52, %v417_v10  ;;  %v454_v13 = vadd.f32 %v929_v52, %v453_v11 }
  0xcc   : > { %619 = vst.msk [vmem:[%s938_s4 + $0xf0] sm:$0xff] %vm588_vm2, %v570_v8 }
  0xcd   : > { %631 = vst.msk [vmem:[%s938_s4 + $0x150] sm:$0xff] %vm588_vm2, %v582_v9  ;;  %v547_v14 = vmax.f32 %v418_v12, 0.0  ;;  %v559_v15 = vmax.f32 %v454_v13, 0.0 }
  0xcf   : > { %596 = vst.msk [vmem:[%s938_s4 + $0x38] sm:$0xff] %vm588_vm2, %v547_v14  ;;  %v489_v16 = vpop.f32.mrf.mxu2  ;;  %v525_v17 = vpop.f32.mrf.mxu3 }
  0xd0   : > { %608 = vst.msk [vmem:[%s938_s4 + $0x98] sm:$0xff] %vm588_vm2, %v559_v15  ;;  %v490_v18 = vadd.f32 %v929_v52, %v489_v16  ;;  %v526_v19 = vadd.f32 %v929_v52, %v525_v17 }
  0xd2   : > { %v571_v20 = vmax.f32 %v490_v18, 0.0  ;;  %v583_v21 = vmax.f32 %v526_v19, 0.0  ;;  %v420_v22 = vpop.f32.mrf.mxu0  ;;  %v456_v23 = vpop.f32.mrf.mxu1 }
  0xd3   : > { %v421_v24 = vadd.f32 %v929_v52, %v420_v22  ;;  %v457_v25 = vadd.f32 %v929_v52, %v456_v23 }
  0xd4   : > { %620 = vst.msk [vmem:[%s938_s4 + $0xf8] sm:$0xff] %vm588_vm2, %v571_v20 }
  0xd5   : > { %632 = vst.msk [vmem:[%s938_s4 + $0x158] sm:$0xff] %vm588_vm2, %v583_v21  ;;  %v548_v26 = vmax.f32 %v421_v24, 0.0  ;;  %v560_v27 = vmax.f32 %v457_v25, 0.0 }
  0xd7   : > { %597 = vst.msk [vmem:[%s938_s4 + $0x40] sm:$0xff] %vm588_vm2, %v548_v26  ;;  %v492_v28 = vpop.f32.mrf.mxu2  ;;  %v528_v29 = vpop.f32.mrf.mxu3 }
  0xd8   : > { %609 = vst.msk [vmem:[%s938_s4 + $0xa0] sm:$0xff] %vm588_vm2, %v560_v27  ;;  %v493_v30 = vadd.f32 %v929_v52, %v492_v28  ;;  %v529_v31 = vadd.f32 %v929_v52, %v528_v29 }
  0xda   : > { %v572_v32 = vmax.f32 %v493_v30, 0.0  ;;  %v584_v33 = vmax.f32 %v529_v31, 0.0  ;;  %v423_v34 = vpop.f32.mrf.mxu0  ;;  %v459_v35 = vpop.f32.mrf.mxu1 }
  0xdb   : > { %v424_v36 = vadd.f32 %v929_v52, %v423_v34  ;;  %v460_v37 = vadd.f32 %v929_v52, %v459_v35 }
  0xdc   : > { %621 = vst.msk [vmem:[%s938_s4 + $0x100] sm:$0xff] %vm588_vm2, %v572_v32 }
  0xdd   : > { %633 = vst.msk [vmem:[%s938_s4 + $0x160] sm:$0xff] %vm588_vm2, %v584_v33  ;;  %v549_v38 = vmax.f32 %v424_v36, 0.0  ;;  %v561_v39 = vmax.f32 %v460_v37, 0.0 }
  0xdf   : > { %598 = vst.msk [vmem:[%s938_s4 + $0x48] sm:$0xff] %vm588_vm2, %v549_v38  ;;  %v495_v40 = vpop.f32.mrf.mxu2  ;;  %v531_v41 = vpop.f32.mrf.mxu3 }
  0xe0   : > { %610 = vst.msk [vmem:[%s938_s4 + $0xa8] sm:$0xff] %vm588_vm2, %v561_v39  ;;  %v496_v42 = vadd.f32 %v929_v52, %v495_v40  ;;  %v532_v43 = vadd.f32 %v929_v52, %v531_v41 }
  0xe2   : > { %v573_v44 = vmax.f32 %v496_v42, 0.0  ;;  %v585_v45 = vmax.f32 %v532_v43, 0.0  ;;  %v426_v46 = vpop.f32.mrf.mxu0  ;;  %v462_v47 = vpop.f32.mrf.mxu1 }
  0xe3   : > { %v427_v48 = vadd.f32 %v929_v52, %v426_v46  ;;  %v463_v49 = vadd.f32 %v929_v52, %v462_v47 }
  0xe4   : > { %622 = vst.msk [vmem:[%s938_s4 + $0x108] sm:$0xff] %vm588_vm2, %v573_v44 }
  0xe5   : > { %634 = vst.msk [vmem:[%s938_s4 + $0x168] sm:$0xff] %vm588_vm2, %v585_v45  ;;  %v550_v50 = vmax.f32 %v427_v48, 0.0  ;;  %v562_v51 = vmax.f32 %v463_v49, 0.0 }
  0xe7   : > { %599 = vst.msk [vmem:[%s938_s4 + $0x50] sm:$0xff] %vm588_vm2, %v550_v50  ;;  %v498_v53 = vpop.f32.mrf.mxu2  ;;  %v534_v54 = vpop.f32.mrf.mxu3 }
  0xe8   : > { %611 = vst.msk [vmem:[%s938_s4 + $0xb0] sm:$0xff] %vm588_vm2, %v562_v51  ;;  %v499_v55 = vadd.f32 %v929_v52, %v498_v53  ;;  %v535_v56 = vadd.f32 %v929_v52, %v534_v54 }
  0xea   : > { %v574_v57 = vmax.f32 %v499_v55, 0.0  ;;  %v586_v58 = vmax.f32 %v535_v56, 0.0  ;;  %v429_v59 = vpop.f32.mrf.mxu0  ;;  %v465_v60 = vpop.f32.mrf.mxu1 }
  0xeb   : > { %v430_v61 = vadd.f32 %v929_v52, %v429_v59  ;;  %v466_v62 = vadd.f32 %v929_v52, %v465_v60 }
  0xec   : > { %623 = vst.msk [vmem:[%s938_s4 + $0x110] sm:$0xff] %vm588_vm2, %v574_v57 }
  0xed   : > { %635 = vst.msk [vmem:[%s938_s4 + $0x170] sm:$0xff] %vm588_vm2, %v586_v58  ;;  %v551_v63 = vmax.f32 %v430_v61, 0.0  ;;  %v563_v0 = vmax.f32 %v466_v62, 0.0 }
  0xef   : > { %600 = vst.msk [vmem:[%s938_s4 + $0x58] sm:$0xff] %vm588_vm2, %v551_v63  ;;  %v501_v1 = vpop.f32.mrf.mxu2  ;;  %v537_v2 = vpop.f32.mrf.mxu3 }
  0xf0   : > { %612 = vst.msk [vmem:[%s938_s4 + $0xb8] sm:$0xff] %vm588_vm2, %v563_v0  ;;  %v502_v3 = vadd.f32 %v929_v52, %v501_v1  ;;  %v538_v4 = vadd.f32 %v929_v52, %v537_v2 }
  0xf2   : > { %v575_v5 = vmax.f32 %v502_v3, 0.0  ;;  %v587_v6 = vmax.f32 %v538_v4, 0.0 }
  0xf4   : > { %624 = vst.msk [vmem:[%s938_s4 + $0x118] sm:$0xff] %vm588_vm2, %v575_v5 }
  0xf5   : > { %636 = vst.msk [vmem:[%s938_s4 + $0x178] sm:$0xff] %vm588_vm2, %v587_v6 }
  0xf6 PF: > { %s13_s12 = sadd.s32 1, %s778_s12  }
  0xf7   : > { %p10_p4 = scmp.ge.s32.totalorder %s13_s12, 5  }
  0xf9   :  { %12 = sbr.rel (!%p10_p4) target bundleno = 1 (0x1), region = 62 }

// kernel: simple_cnn_forward.6
= control target key start
LH: loop header
LB: loop body
LE: loop exit
PB: predicated region body
PF: predicated region fallthrough
CT: control target
= control target key end

     0   :  { %s253_s0 = inlined_call_operand.vmem [shape: f32[24,384], index: 0, kind: input, shape index: {}]   ;;  %s254_s1 = inlined_call_operand.vmem [shape: f32[24,384], index: 1, kind: input, shape index: {}]   ;;  %s255_s2 = inlined_call_operand.vmem [shape: f32[24,384], index: 2, kind: input, shape index: {}]   ;;  %s256_s3 = inlined_call_operand.vmem [shape: f32[24,384], index: 3, kind: input, shape index: {}]   ;;  %s257_s4 = inlined_call_operand.vmem [shape: f32[24,384], index: 4, kind: output, shape index: {}]  }
   0x1   :  { %v17_v0 = vld [vmem:[%s253_s0] sm:$0xff]  ;;  %v18_v5 = vld [vmem:[%s253_s0 + $0x8] sm:$0xff]  ;;  %v19_v11 = vld [vmem:[%s253_s0 + $0x10] sm:$0xff] }
   0x2   :  { %v26_v1 = vld [vmem:[%s254_s1] sm:$0xff]  ;;  %v27_v6 = vld [vmem:[%s254_s1 + $0x8] sm:$0xff]  ;;  %v28_v13 = vld [vmem:[%s254_s1 + $0x10] sm:$0xff] }
   0x3   :  { %v44_v2 = vld [vmem:[%s255_s2] sm:$0xff]  ;;  %v35_v3 = vmax.f32 %v17_v0, %v26_v1  ;;  %v36_v8 = vmax.f32 %v18_v5, %v27_v6  ;;  %v45_v9 = vld [vmem:[%s255_s2 + $0x8] sm:$0xff]  ;;  %v46_v14 = vld [vmem:[%s255_s2 + $0x10] sm:$0xff]  ;;  %v37_v17 = vmax.f32 %v19_v11, %v28_v13 }
   0x4   :  { %v53_v4 = vld [vmem:[%s256_s3] sm:$0xff]  ;;  %v54_v10 = vld [vmem:[%s256_s3 + $0x8] sm:$0xff]  ;;  %v55_v15 = vld [vmem:[%s256_s3 + $0x10] sm:$0xff] }
   0x5   :  { %v62_v7 = vmax.f32 %v44_v2, %v53_v4  ;;  %v63_v12 = vmax.f32 %v45_v9, %v54_v10  ;;  %v64_v18 = vmax.f32 %v46_v14, %v55_v15  ;;  %v20_v19 = vld [vmem:[%s253_s0 + $0x18] sm:$0xff]  ;;  %v21_v25 = vld [vmem:[%s253_s0 + $0x20] sm:$0xff]  ;;  %v22_v32 = vld [vmem:[%s253_s0 + $0x28] sm:$0xff] }
   0x6   :  { %v29_v20 = vld [vmem:[%s254_s1 + $0x18] sm:$0xff]  ;;  %v30_v26 = vld [vmem:[%s254_s1 + $0x20] sm:$0xff]  ;;  %v31_v34 = vld [vmem:[%s254_s1 + $0x28] sm:$0xff] }
   0x7   :  { %v71_v16 = vmax.f32 %v35_v3, %v62_v7  ;;  %v47_v21 = vld [vmem:[%s255_s2 + $0x18] sm:$0xff]  ;;  %v72_v22 = vmax.f32 %v36_v8, %v63_v12  ;;  %v38_v23 = vmax.f32 %v20_v19, %v29_v20  ;;  %v73_v27 = vmax.f32 %v37_v17, %v64_v18  ;;  %v48_v30 = vld [vmem:[%s255_s2 + $0x20] sm:$0xff]  ;;  %v49_v35 = vld [vmem:[%s255_s2 + $0x28] sm:$0xff] }
   0x8   :  { %v56_v24 = vld [vmem:[%s256_s3 + $0x18] sm:$0xff]  ;;  %v39_v29 = vmax.f32 %v21_v25, %v30_v26  ;;  %v57_v31 = vld [vmem:[%s256_s3 + $0x20] sm:$0xff]  ;;  %v58_v36 = vld [vmem:[%s256_s3 + $0x28] sm:$0xff]  ;;  %v40_v38 = vmax.f32 %v22_v32, %v31_v34 }
   0x9   :  { %80 = vst [vmem:[%s257_s4] sm:$0xff] %v71_v16  ;;  %v65_v28 = vmax.f32 %v47_v21, %v56_v24  ;;  %v66_v33 = vmax.f32 %v48_v30, %v57_v31  ;;  %v67_v39 = vmax.f32 %v49_v35, %v58_v36  ;;  %v23_v40 = vld [vmem:[%s253_s0 + $0x30] sm:$0xff]  ;;  %v24_v46 = vld [vmem:[%s253_s0 + $0x38] sm:$0xff]  ;;  %v25_v53 = vld [vmem:[%s253_s0 + $0x40] sm:$0xff] }
   0xa   :  { %81 = vst [vmem:[%s257_s4 + $0x8] sm:$0xff] %v72_v22  ;;  %v32_v41 = vld [vmem:[%s254_s1 + $0x30] sm:$0xff]  ;;  %v33_v47 = vld [vmem:[%s254_s1 + $0x38] sm:$0xff]  ;;  %v34_v55 = vld [vmem:[%s254_s1 + $0x40] sm:$0xff] }
   0xb   :  { %82 = vst [vmem:[%s257_s4 + $0x10] sm:$0xff] %v73_v27  ;;  %v74_v37 = vmax.f32 %v38_v23, %v65_v28  ;;  %v50_v42 = vld [vmem:[%s255_s2 + $0x30] sm:$0xff]  ;;  %v75_v43 = vmax.f32 %v39_v29, %v66_v33  ;;  %v41_v44 = vmax.f32 %v23_v40, %v32_v41  ;;  %v76_v48 = vmax.f32 %v40_v38, %v67_v39  ;;  %v51_v51 = vld [vmem:[%s255_s2 + $0x38] sm:$0xff]  ;;  %v52_v56 = vld [vmem:[%s255_s2 + $0x40] sm:$0xff] }
   0xc   :  { %v59_v45 = vld [vmem:[%s256_s3 + $0x30] sm:$0xff]  ;;  %v42_v50 = vmax.f32 %v24_v46, %v33_v47  ;;  %v60_v52 = vld [vmem:[%s256_s3 + $0x38] sm:$0xff]  ;;  %v61_v57 = vld [vmem:[%s256_s3 + $0x40] sm:$0xff]  ;;  %v43_v59 = vmax.f32 %v25_v53, %v34_v55 }
   0xd   :  { %83 = vst [vmem:[%s257_s4 + $0x18] sm:$0xff] %v74_v37  ;;  %v68_v49 = vmax.f32 %v50_v42, %v59_v45  ;;  %v69_v54 = vmax.f32 %v51_v51, %v60_v52  ;;  %v70_v60 = vmax.f32 %v52_v56, %v61_v57 }
   0xe   :  { %84 = vst [vmem:[%s257_s4 + $0x20] sm:$0xff] %v75_v43 }
   0xf   :  { %85 = vst [vmem:[%s257_s4 + $0x28] sm:$0xff] %v76_v48  ;;  %v77_v58 = vmax.f32 %v41_v44, %v68_v49  ;;  %v78_v61 = vmax.f32 %v42_v50, %v69_v54  ;;  %v79_v62 = vmax.f32 %v43_v59, %v70_v60 }
  0x11   :  { %86 = vst [vmem:[%s257_s4 + $0x30] sm:$0xff] %v77_v58 }
  0x12   :  { %87 = vst [vmem:[%s257_s4 + $0x38] sm:$0xff] %v78_v61 }
  0x13   :  { %88 = vst [vmem:[%s257_s4 + $0x40] sm:$0xff] %v79_v62 }

// kernel: simple_cnn_forward.7
= control target key start
LH: loop header
LB: loop body
LE: loop exit
PB: predicated region body
PF: predicated region fallthrough
CT: control target
= control target key end

     0   :  { %vm230_vm0 = vcmask 261120   ;;  %vm750_vm1 = vcmask 523264   ;;  %s1784_s1 = inlined_call_operand.vmem [shape: f32[800,64], index: 1, kind: input, shape index: {}]   ;;  %s1785_s2 = inlined_call_operand.vmem [shape: f32[1,64], index: 2, kind: input, shape index: {}]   ;;  %s1786_s0 = inlined_call_operand.vmem [shape: f32[128,800], index: 0, kind: input, shape index: {}]   ;;  %s1787_s3 = inlined_call_operand.vmem [shape: f32[128,64], index: 3, kind: output, shape index: {}]  }
   0x1   :  { %v141_v0 = vld [vmem:[%s1784_s1 + $0x78] sm:$0xff]  ;;  %v140_v1 = vld [vmem:[%s1784_s1 + $0x70] sm:$0xff]  ;;  %v139_v4 = vld [vmem:[%s1784_s1 + $0x68] sm:$0xff] }
   0x2   :  { %279 = vmatpush.msra.mxu0 %v141_v0  ;;  %787 = vmatpush.msra.mxu3 %v141_v0  ;;  %v865_v2 = vld [vmem:[%s1784_s1 + $0x178] sm:$0xff]  ;;  %v870_v3 = vld [vmem:[%s1784_s1 + $0x170] sm:$0xff]  ;;  %v884_v6 = vld [vmem:[%s1784_s1 + $0x168] sm:$0xff] }
   0x3   :  { %819 = vmatpush.msra.mxu2 %v865_v2  ;;  %v879_v5 = vld [vmem:[%s1784_s1 + $0xf8] sm:$0xff]  ;;  %v889_v7 = vld [vmem:[%s1784_s1 + $0xf0] sm:$0xff]  ;;  %v138_v8 = vld [vmem:[%s1784_s1 + $0x60] sm:$0xff] }
   0x4   :  { %280 = vmatpush.msra.mxu0 %v140_v1  ;;  %788 = vmatpush.msra.mxu3 %v140_v1  ;;  %v899_v9 = vld [vmem:[%s1784_s1 + $0x160] sm:$0xff]  ;;  %v904_v10 = vld [vmem:[%s1784_s1 + $0xe8] sm:$0xff]  ;;  %v137_v11 = vld [vmem:[%s1784_s1 + $0x58] sm:$0xff] }
   0x5   :  { %820 = vmatpush.msra.mxu2 %v870_v3  ;;  %803 = vmatpush.msra.mxu1 %v879_v5  ;;  %v914_v12 = vld [vmem:[%s1784_s1 + $0x158] sm:$0xff]  ;;  %v919_v13 = vld [vmem:[%s1784_s1 + $0xe0] sm:$0xff]  ;;  %v136_v14 = vld [vmem:[%s1784_s1 + $0x50] sm:$0xff] }
   0x6   :  { %281 = vmatpush.msra.mxu0 %v139_v4  ;;  %789 = vmatpush.msra.mxu3 %v139_v4  ;;  %v929_v15 = vld [vmem:[%s1784_s1 + $0x150] sm:$0xff]  ;;  %v934_v16 = vld [vmem:[%s1784_s1 + $0xd8] sm:$0xff]  ;;  %v135_v17 = vld [vmem:[%s1784_s1 + $0x48] sm:$0xff] }
   0x7   :  { %821 = vmatpush.msra.mxu2 %v884_v6  ;;  %804 = vmatpush.msra.mxu1 %v889_v7  ;;  %v944_v18 = vld [vmem:[%s1784_s1 + $0x148] sm:$0xff]  ;;  %v949_v19 = vld [vmem:[%s1784_s1 + $0xd0] sm:$0xff]  ;;  %v134_v20 = vld [vmem:[%s1784_s1 + $0x40] sm:$0xff] }
   0x8   :  { %282 = vmatpush.msra.mxu0 %v138_v8  ;;  %790 = vmatpush.msra.mxu3 %v138_v8  ;;  %v959_v21 = vld [vmem:[%s1784_s1 + $0x140] sm:$0xff]  ;;  %v964_v22 = vld [vmem:[%s1784_s1 + $0xc8] sm:$0xff]  ;;  %v133_v23 = vld [vmem:[%s1784_s1 + $0x38] sm:$0xff] }
   0x9   :  { %822 = vmatpush.msra.mxu2 %v899_v9  ;;  %805 = vmatpush.msra.mxu1 %v904_v10  ;;  %v974_v24 = vld [vmem:[%s1784_s1 + $0x138] sm:$0xff]  ;;  %v979_v25 = vld [vmem:[%s1784_s1 + $0xc0] sm:$0xff]  ;;  %v132_v26 = vld [vmem:[%s1784_s1 + $0x30] sm:$0xff] }
   0xa   :  { %283 = vmatpush.msra.mxu0 %v137_v11  ;;  %791 = vmatpush.msra.mxu3 %v137_v11  ;;  %v989_v27 = vld [vmem:[%s1784_s1 + $0x130] sm:$0xff]  ;;  %v994_v28 = vld [vmem:[%s1784_s1 + $0xb8] sm:$0xff]  ;;  %v131_v29 = vld [vmem:[%s1784_s1 + $0x28] sm:$0xff] }
   0xb   :  { %823 = vmatpush.msra.mxu2 %v914_v12  ;;  %806 = vmatpush.msra.mxu1 %v919_v13  ;;  %v1004_v30 = vld [vmem:[%s1784_s1 + $0x128] sm:$0xff]  ;;  %v1009_v31 = vld [vmem:[%s1784_s1 + $0xb0] sm:$0xff]  ;;  %v130_v32 = vld [vmem:[%s1784_s1 + $0x20] sm:$0xff] }
   0xc   :  { %284 = vmatpush.msra.mxu0 %v136_v14  ;;  %792 = vmatpush.msra.mxu3 %v136_v14  ;;  %v1019_v33 = vld [vmem:[%s1784_s1 + $0x120] sm:$0xff]  ;;  %v1024_v34 = vld [vmem:[%s1784_s1 + $0xa8] sm:$0xff]  ;;  %v129_v35 = vld [vmem:[%s1784_s1 + $0x18] sm:$0xff] }
   0xd   :  { %824 = vmatpush.msra.mxu2 %v929_v15  ;;  %807 = vmatpush.msra.mxu1 %v934_v16  ;;  %v1034_v36 = vld [vmem:[%s1784_s1 + $0x118] sm:$0xff]  ;;  %v1039_v37 = vld [vmem:[%s1784_s1 + $0xa0] sm:$0xff]  ;;  %v128_v38 = vld [vmem:[%s1784_s1 + $0x10] sm:$0xff] }
   0xe   :  { %285 = vmatpush.msra.mxu0 %v135_v17  ;;  %793 = vmatpush.msra.mxu3 %v135_v17  ;;  %v1049_v39 = vld [vmem:[%s1784_s1 + $0x110] sm:$0xff]  ;;  %v1054_v40 = vld [vmem:[%s1784_s1 + $0x98] sm:$0xff]  ;;  %v127_v41 = vld [vmem:[%s1784_s1 + $0x8] sm:$0xff] }
   0xf   :  { %825 = vmatpush.msra.mxu2 %v944_v18  ;;  %808 = vmatpush.msra.mxu1 %v949_v19  ;;  %v1064_v42 = vld [vmem:[%s1784_s1 + $0x108] sm:$0xff]  ;;  %v1069_v43 = vld [vmem:[%s1784_s1 + $0x90] sm:$0xff]  ;;  %v126_v44 = vld [vmem:[%s1784_s1] sm:$0xff] }
  0x10   :  { %286 = vmatpush.msra.mxu0 %v134_v20  ;;  %794 = vmatpush.msra.mxu3 %v134_v20  ;;  %v14_v45 = vld [vmem:[%s1786_s0] sm:$0xff]  ;;  %v189_v47 = vld [vmem:[%s1784_s1 + $0x1f8] sm:$0xff]  ;;  %v1095_v49 = vld [vmem:[%s1784_s1 + $0x88] sm:$0xff] }
  0x11   :  { %826 = vmatpush.msra.mxu2 %v959_v21  ;;  %809 = vmatpush.msra.mxu1 %v964_v22  ;;  %v42_v46 = vld [vmem:[%s1786_s0 + $0xe0] sm:$0xff]  ;;  %v44_v50 = vld [vmem:[%s1786_s0 + $0xf0] sm:$0xff]  ;;  %v225_v52 = vld [vmem:[%s1784_s1 + $0x318] sm:$0xff] }
  0x12   :  { %287 = vmatpush.msra.mxu0 %v133_v23  ;;  %795 = vmatpush.msra.mxu3 %v133_v23  ;;  %v1090_v48 = vld [vmem:[%s1784_s1 + $0x100] sm:$0xff]  ;;  %v188_v51 = vld [vmem:[%s1784_s1 + $0x1f0] sm:$0xff]  ;;  %v43_v54 = vld [vmem:[%s1786_s0 + $0xe8] sm:$0xff] }
  0x13   :  { %827 = vmatpush.msra.mxu2 %v974_v24  ;;  %810 = vmatpush.msra.mxu1 %v979_v25  ;;  %v1112_v53 = vld [vmem:[%s1784_s1 + $0x80] sm:$0xff]  ;;  %v187_v55 = vld [vmem:[%s1784_s1 + $0x1e8] sm:$0xff]  ;;  %v221_v56 = vld [vmem:[%s1784_s1 + $0x2f8] sm:$0xff] }
  0x14   :  { %288 = vmatpush.msra.mxu0 %v132_v26  ;;  %796 = vmatpush.msra.mxu3 %v132_v26  ;;  %v21_v57 = vld [vmem:[%s1786_s0 + $0x38] sm:$0xff]  ;;  %v220_v59 = vld [vmem:[%s1784_s1 + $0x2f0] sm:$0xff]  ;;  %v186_v60 = vld [vmem:[%s1784_s1 + $0x1e0] sm:$0xff] }
  0x15   :  { %828 = vmatpush.msra.mxu2 %v989_v27  ;;  %811 = vmatpush.msra.mxu1 %v994_v28  ;;  %v49_v58 = vld [vmem:[%s1786_s0 + $0x118] sm:$0xff]  ;;  %v224_v61 = vld [vmem:[%s1784_s1 + $0x310] sm:$0xff]  ;;  %v51_v62 = vld [vmem:[%s1786_s0 + $0x128] sm:$0xff] }
  0x16   :  { %289 = vmatpush.msra.mxu0 %v131_v29  ;;  %797 = vmatpush.msra.mxu3 %v131_v29  ;;  %v219_v63 = vld [vmem:[%s1784_s1 + $0x2e8] sm:$0xff]  ;;  %v185_v0 = vld [vmem:[%s1784_s1 + $0x1d8] sm:$0xff]  ;;  %v50_v1 = vld [vmem:[%s1786_s0 + $0x120] sm:$0xff] }
  0x17   :  { %829 = vmatpush.msra.mxu2 %v1004_v30  ;;  %812 = vmatpush.msra.mxu1 %v1009_v31  ;;  %v184_v4 = vld [vmem:[%s1784_s1 + $0x1d0] sm:$0xff]  ;;  %v183_v11 = vld [vmem:[%s1784_s1 + $0x1c8] sm:$0xff]  ;;  %v57_v17 = vld [vmem:[%s1786_s0 + $0x158] sm:$0xff] }
  0x18   :  { %290 = vmatpush.msra.mxu0 %v130_v32  ;;  %798 = vmatpush.msra.mxu3 %v130_v32  ;;  %v56_v8 = vld [vmem:[%s1786_s0 + $0x150] sm:$0xff]  ;;  %v215_v20 = vld [vmem:[%s1784_s1 + $0x2c8] sm:$0xff]  ;;  %v65_v29 = vld [vmem:[%s1786_s0 + $0x198] sm:$0xff] }
  0x19   :  { %830 = vmatpush.msra.mxu2 %v1019_v33  ;;  %813 = vmatpush.msra.mxu1 %v1024_v34  ;;  %v216_v14 = vld [vmem:[%s1784_s1 + $0x2d0] sm:$0xff]  ;;  %v63_v23 = vld [vmem:[%s1786_s0 + $0x188] sm:$0xff] }
  0x1a   :  { %291 = vmatpush.msra.mxu0 %v129_v35  ;;  %799 = vmatpush.msra.mxu3 %v129_v35  ;;  %v180_v26 = vld [vmem:[%s1784_s1 + $0x1b0] sm:$0xff]  ;;  %v70_v35 = vld [vmem:[%s1786_s0 + $0x1c0] sm:$0xff] }
  0x1b   :  { %831 = vmatpush.msra.mxu2 %v1034_v36  ;;  %814 = vmatpush.msra.mxu1 %v1039_v37  ;;  %v64_v32 = vld [vmem:[%s1786_s0 + $0x190] sm:$0xff] }
  0x1c   :  { %292 = vmatpush.msra.mxu0 %v128_v38  ;;  %800 = vmatpush.msra.mxu3 %v128_v38  ;;  %v72_v38 = vld [vmem:[%s1786_s0 + $0x1d0] sm:$0xff] }
  0x1d   :  { %832 = vmatpush.msra.mxu2 %v1049_v39  ;;  %815 = vmatpush.msra.mxu1 %v1054_v40 }
  0x1e   :  { %293 = vmatpush.msra.mxu0 %v127_v41  ;;  %801 = vmatpush.msra.mxu3 %v127_v41  ;;  %v178_v41 = vld [vmem:[%s1784_s1 + $0x1a0] sm:$0xff] }
  0x1f   :  { %833 = vmatpush.msra.mxu2 %v1064_v42  ;;  %816 = vmatpush.msra.mxu1 %v1069_v43 }
  0x20   :  { %294 = vmatpush.msra.mxu0 %v126_v44  ;;  %802 = vmatpush.msra.mxu3 %v126_v44  ;;  %v211_v44 = vld [vmem:[%s1784_s1 + $0x2a8] sm:$0xff] }
  0x21   :  { %295 = vmatmul.f32.vlgmr.msra.gmra.mxu0 %v14_v45  ;;  %307 = vmatmul.f32.vlgmr.msra.gmra.mxu3 %v42_v46  ;;  %v79_v45 = vld [vmem:[%s1786_s0 + $0x208] sm:$0xff]  ;;  %v210_v46 = vld [vmem:[%s1784_s1 + $0x2a0] sm:$0xff] }
  0x22   :  { %474 = vmatpush.msrb.mxu3 %v189_v47  ;;  %344 = vmatpush.msrb.mxu0 %v879_v5  ;;  %v218_v5 = vld [vmem:[%s1784_s1 + $0x2e0] sm:$0xff]  ;;  %v176_v47 = vld [vmem:[%s1784_s1 + $0x190] sm:$0xff] }
  0x23   :  { %834 = vmatpush.msra.mxu2 %v1090_v48  ;;  %817 = vmatpush.msra.mxu1 %v1095_v49 }
  0x24   :  { %345 = vmatpush.msrb.mxu0 %v889_v7  ;;  %437 = vmatmul.f32.vlgmr.msra.gmra.mxu2 %v44_v50  ;;  %v28_v7 = vld [vmem:[%s1786_s0 + $0x70] sm:$0xff]  ;;  %v86_v50 = vld [vmem:[%s1786_s0 + $0x240] sm:$0xff] }
  0x25   :  { %475 = vmatpush.msrb.mxu3 %v188_v51  ;;  %681 = vmatpush.msrb.mxu2 %v225_v52  ;;  %v175_v51 = vld [vmem:[%s1784_s1 + $0x188] sm:$0xff] }
  0x26   :  { %346 = vmatpush.msrb.mxu0 %v904_v10  ;;  %818 = vmatpush.msra.mxu1 %v1112_v53  ;;  %v217_v10 = vld [vmem:[%s1784_s1 + $0x2d8] sm:$0xff]  ;;  %v91_v52 = vld [vmem:[%s1786_s0 + $0x268] sm:$0xff] }
  0x27   :  { %372 = vmatmul.f32.vlgmr.msra.gmra.mxu1 %v43_v54  ;;  %476 = vmatpush.msrb.mxu3 %v187_v55  ;;  %v207_v54 = vld [vmem:[%s1784_s1 + $0x288] sm:$0xff]  ;;  %v205_v55 = vld [vmem:[%s1784_s1 + $0x278] sm:$0xff] }
  0x28   :  { %347 = vmatpush.msrb.mxu0 %v919_v13  ;;  %604 = vmatpush.msrb.mxu1 %v221_v56  ;;  %v58_v13 = vld [vmem:[%s1786_s0 + $0x160] sm:$0xff]  ;;  %v204_v56 = vld [vmem:[%s1784_s1 + $0x270] sm:$0xff] }
  0x29   :  { %298 = vmatmul.f32.gmra.mxu0 %v21_v57  ;;  %310 = vmatmul.f32.gmra.mxu3 %v49_v58  ;;  %v206_v57 = vld [vmem:[%s1784_s1 + $0x280] sm:$0xff]  ;;  %v203_v58 = vld [vmem:[%s1784_s1 + $0x268] sm:$0xff] }
  0x2a   :  { %348 = vmatpush.msrb.mxu0 %v934_v16  ;;  %605 = vmatpush.msrb.mxu1 %v220_v59  ;;  %v182_v16 = vld [vmem:[%s1784_s1 + $0x1c0] sm:$0xff] }
  0x2b   :  { %477 = vmatpush.msrb.mxu3 %v186_v60  ;;  %682 = vmatpush.msrb.mxu2 %v224_v61  ;;  %v202_v59 = vld [vmem:[%s1784_s1 + $0x260] sm:$0xff]  ;;  %v105_v60 = vld [vmem:[%s1786_s0 + $0x2d8] sm:$0xff]  ;;  %v23_v61 = vld [vmem:[%s1786_s0 + $0x48] sm:$0xff] }
  0x2c   :  { %349 = vmatpush.msrb.mxu0 %v949_v19  ;;  %440 = vmatmul.f32.gmra.mxu2 %v51_v62  ;;  %v181_v19 = vld [vmem:[%s1784_s1 + $0x1b8] sm:$0xff] }
  0x2d   :  { %606 = vmatpush.msrb.mxu1 %v219_v63  ;;  %478 = vmatpush.msrb.mxu3 %v185_v0  ;;  %v201_v62 = vld [vmem:[%s1784_s1 + $0x258] sm:$0xff]  ;;  %v107_v63 = vld [vmem:[%s1786_s0 + $0x2e8] sm:$0xff]  ;;  %v200_v0 = vld [vmem:[%s1784_s1 + $0x250] sm:$0xff] }
  0x2e   :  { %350 = vmatpush.msrb.mxu0 %v964_v22  ;;  %v35_v22 = vld [vmem:[%s1786_s0 + $0xa8] sm:$0xff] }
  0x2f   :  { %375 = vmatmul.f32.gmra.mxu1 %v50_v1  ;;  %479 = vmatpush.msrb.mxu3 %v184_v4  ;;  %v199_v1 = vld [vmem:[%s1784_s1 + $0x248] sm:$0xff]  ;;  %v106_v4 = vld [vmem:[%s1786_s0 + $0x2e0] sm:$0xff] }
  0x30   :  { %351 = vmatpush.msrb.mxu0 %v979_v25  ;;  %607 = vmatpush.msrb.mxu1 %v218_v5  ;;  %v214_v25 = vld [vmem:[%s1784_s1 + $0x2c0] sm:$0xff] }
  0x31   :  { %301 = vmatmul.f32.gmra.mxu0 %v28_v7  ;;  %313 = vmatmul.f32.gmra.mxu3 %v56_v8  ;;  %v198_v5 = vld [vmem:[%s1784_s1 + $0x240] sm:$0xff]  ;;  %v112_v7 = vld [vmem:[%s1786_s0 + $0x310] sm:$0xff] }
  0x32   :  { %352 = vmatpush.msrb.mxu0 %v994_v28  ;;  %608 = vmatpush.msrb.mxu1 %v217_v10  ;;  %v223_v28 = vld [vmem:[%s1784_s1 + $0x308] sm:$0xff]  ;;  %v30_v8 = vld [vmem:[%s1786_s0 + $0x80] sm:$0xff]  ;;  %v197_v10 = vld [vmem:[%s1784_s1 + $0x238] sm:$0xff] }
  0x33   :  { %480 = vmatpush.msrb.mxu3 %v183_v11  ;;  %683 = vmatpush.msrb.mxu2 %v223_v28  ;;  %v114_v11 = vld [vmem:[%s1786_s0 + $0x320] sm:$0xff]  ;;  %v120_v28 = vld [vmem:[%s1786_s0 + $0x350] sm:$0xff] }
  0x34   :  { %353 = vmatpush.msrb.mxu0 %v1009_v31  ;;  %443 = vmatmul.f32.gmra.mxu2 %v58_v13  ;;  %v213_v31 = vld [vmem:[%s1784_s1 + $0x2b8] sm:$0xff]  ;;  %v196_v13 = vld [vmem:[%s1784_s1 + $0x230] sm:$0xff] }
  0x35   :  { %609 = vmatpush.msrb.mxu1 %v216_v14  ;;  %481 = vmatpush.msrb.mxu3 %v182_v16  ;;  %v195_v14 = vld [vmem:[%s1784_s1 + $0x228] sm:$0xff]  ;;  %v113_v16 = vld [vmem:[%s1786_s0 + $0x318] sm:$0xff] }
  0x36   :  { %354 = vmatpush.msrb.mxu0 %v1024_v34  ;;  %v179_v34 = vld [vmem:[%s1784_s1 + $0x1a8] sm:$0xff] }
  0x37   :  { %378 = vmatmul.f32.gmra.mxu1 %v57_v17  ;;  %482 = vmatpush.msrb.mxu3 %v181_v19  ;;  %v194_v17 = vld [vmem:[%s1784_s1 + $0x220] sm:$0xff]  ;;  %v119_v19 = vld [vmem:[%s1786_s0 + $0x348] sm:$0xff] }
  0x38   :  { %355 = vmatpush.msrb.mxu0 %v1039_v37  ;;  %610 = vmatpush.msrb.mxu1 %v215_v20  ;;  %v15_v37 = vld [vmem:[%s1786_s0 + $0x8] sm:$0xff]  ;;  %v37_v20 = vld [vmem:[%s1786_s0 + $0xb8] sm:$0xff] }
  0x39   :  { %304 = vmatmul.f32.gmra.mxu0 %v35_v22  ;;  %316 = vmatmul.f32.gmra.mxu3 %v63_v23  ;;  %v193_v22 = vld [vmem:[%s1784_s1 + $0x218] sm:$0xff] }
  0x3a   :  { %356 = vmatpush.msrb.mxu0 %v1054_v40  ;;  %611 = vmatpush.msrb.mxu1 %v214_v25  ;;  %v212_v40 = vld [vmem:[%s1784_s1 + $0x2b0] sm:$0xff]  ;;  %v121_v23 = vld [vmem:[%s1786_s0 + $0x358] sm:$0xff] }
  0x3b   :  { %483 = vmatpush.msrb.mxu3 %v180_v26  ;;  %v192_v25 = vld [vmem:[%s1784_s1 + $0x210] sm:$0xff]  ;;  %v191_v26 = vld [vmem:[%s1784_s1 + $0x208] sm:$0xff] }
  0x3c   :  { %357 = vmatpush.msrb.mxu0 %v1069_v43  ;;  %446 = vmatmul.f32.gmra.mxu2 %v65_v29  ;;  %v71_v43 = vld [vmem:[%s1786_s0 + $0x1c8] sm:$0xff]  ;;  %v190_v29 = vld [vmem:[%s1784_s1 + $0x200] sm:$0xff] }
  0x3d   :  { %612 = vmatpush.msrb.mxu1 %v213_v31  ;;  %484 = vmatpush.msrb.mxu3 %v179_v34  ;;  %v17_v31 = vld [vmem:[%s1786_s0 + $0x18] sm:$0xff]  ;;  %v20_v34 = vld [vmem:[%s1786_s0 + $0x30] sm:$0xff] }
  0x3e   :  { %358 = vmatpush.msrb.mxu0 %v1095_v49  ;;  %v29_v49 = vld [vmem:[%s1786_s0 + $0x78] sm:$0xff] }
  0x3f   :  { %381 = vmatmul.f32.gmra.mxu1 %v64_v32  ;;  %485 = vmatpush.msrb.mxu3 %v178_v41  ;;  %v18_v32 = vld [vmem:[%s1786_s0 + $0x20] sm:$0xff] }
  0x40   :  { %359 = vmatpush.msrb.mxu0 %v1112_v53  ;;  %613 = vmatpush.msrb.mxu1 %v212_v40  ;;  %v174_v53 = vld [vmem:[%s1784_s1 + $0x180] sm:$0xff]  ;;  %v27_v40 = vld [vmem:[%s1786_s0 + $0x68] sm:$0xff] }
  0x41   :  { %319 = vmatmul.f32.gmra.mxu3 %v70_v35  ;;  %360 = vmatmul.f32.vlgmr.msrb.gmra.mxu0 %v15_v37  ;;  %v19_v35 = vld [vmem:[%s1786_s0 + $0x28] sm:$0xff]  ;;  %v24_v37 = vld [vmem:[%s1786_s0 + $0x50] sm:$0xff]  ;;  %v26_v41 = vld [vmem:[%s1786_s0 + $0x60] sm:$0xff] }
  0x42   :  { %409 = vmatpush.msra.mxu0 %v865_v2  ;;  %614 = vmatpush.msrb.mxu1 %v211_v44  ;;  %v77_v2 = vld [vmem:[%s1786_s0 + $0x1f8] sm:$0xff]  ;;  %v32_v44 = vld [vmem:[%s1786_s0 + $0x90] sm:$0xff] }
  0x44   :  { %410 = vmatpush.msra.mxu0 %v870_v3  ;;  %449 = vmatmul.f32.gmra.mxu2 %v72_v38  ;;  %v22_v3 = vld [vmem:[%s1786_s0 + $0x40] sm:$0xff]  ;;  %v25_v38 = vld [vmem:[%s1786_s0 + $0x58] sm:$0xff] }
  0x45   :  { %615 = vmatpush.msrb.mxu1 %v210_v46  ;;  %v40_v46 = vld [vmem:[%s1786_s0 + $0xd0] sm:$0xff] }
  0x46   :  { %411 = vmatpush.msra.mxu0 %v884_v6  ;;  %v177_v6 = vld [vmem:[%s1784_s1 + $0x198] sm:$0xff] }
  0x47   :  { %384 = vmatmul.f32.gmra.mxu1 %v71_v43  ;;  %486 = vmatpush.msrb.mxu3 %v177_v6  ;;  %v31_v43 = vld [vmem:[%s1786_s0 + $0x88] sm:$0xff] }
  0x48   :  { %412 = vmatpush.msra.mxu0 %v899_v9  ;;  %v78_v9 = vld [vmem:[%s1786_s0 + $0x200] sm:$0xff]  ;;  %v39_v6 = vld [vmem:[%s1786_s0 + $0xc8] sm:$0xff] }
  0x49   :  { %322 = vmatmul.f32.gmra.mxu3 %v77_v2  ;;  %363 = vmatmul.f32.gmra.mxu0 %v22_v3  ;;  %v34_v2 = vld [vmem:[%s1786_s0 + $0xa0] sm:$0xff]  ;;  %v33_v3 = vld [vmem:[%s1786_s0 + $0x98] sm:$0xff] }
  0x4a   :  { %413 = vmatpush.msra.mxu0 %v914_v12  ;;  %487 = vmatpush.msrb.mxu3 %v176_v47  ;;  %v222_v12 = vld [vmem:[%s1784_s1 + $0x300] sm:$0xff] }
  0x4b   :  { %684 = vmatpush.msrb.mxu2 %v222_v12  ;;  %v45_v12 = vld [vmem:[%s1786_s0 + $0xf8] sm:$0xff] }
  0x4c   :  { %414 = vmatpush.msra.mxu0 %v929_v15  ;;  %452 = vmatmul.f32.gmra.mxu2 %v79_v45  ;;  %v84_v15 = vld [vmem:[%s1786_s0 + $0x230] sm:$0xff]  ;;  %v38_v45 = vld [vmem:[%s1786_s0 + $0xc0] sm:$0xff] }
  0x4d   :  { %488 = vmatpush.msrb.mxu3 %v175_v51  ;;  %v47_v51 = vld [vmem:[%s1786_s0 + $0x108] sm:$0xff] }
  0x4e   :  { %415 = vmatpush.msra.mxu0 %v944_v18  ;;  %v209_v18 = vld [vmem:[%s1784_s1 + $0x298] sm:$0xff] }
  0x4f   :  { %387 = vmatmul.f32.gmra.mxu1 %v78_v9  ;;  %489 = vmatpush.msrb.mxu3 %v174_v53  ;;  %v41_v9 = vld [vmem:[%s1786_s0 + $0xd8] sm:$0xff] }
  0x50   :  { %416 = vmatpush.msra.mxu0 %v959_v21  ;;  %616 = vmatpush.msrb.mxu1 %v209_v18  ;;  %v85_v21 = vld [vmem:[%s1786_s0 + $0x238] sm:$0xff] }
  0x51   :  { %325 = vmatmul.f32.gmra.mxu3 %v84_v15  ;;  %366 = vmatmul.f32.gmra.mxu0 %v29_v49  ;;  %v46_v15 = vld [vmem:[%s1786_s0 + $0x100] sm:$0xff] }
  0x52   :  { %417 = vmatpush.msra.mxu0 %v974_v24  ;;  %v36_v24 = vld [vmem:[%s1786_s0 + $0xb0] sm:$0xff]  ;;  %v1491_v49 = vld [vmem:[%s1785_s2] ss:$0 sm:$0xff] }
  0x54   :  { %418 = vmatpush.msra.mxu0 %v989_v27  ;;  %455 = vmatmul.f32.gmra.mxu2 %v86_v50  ;;  %v93_v27 = vld [vmem:[%s1786_s0 + $0x278] sm:$0xff]  ;;  %v48_v50 = vld [vmem:[%s1786_s0 + $0x110] sm:$0xff] }
  0x56   :  { %419 = vmatpush.msra.mxu0 %v1004_v30  ;;  %v208_v30 = vld [vmem:[%s1784_s1 + $0x290] sm:$0xff] }
  0x57   :  { %390 = vmatmul.f32.gmra.mxu1 %v85_v21 }
  0x58   :  { %420 = vmatpush.msra.mxu0 %v1019_v33  ;;  %617 = vmatpush.msrb.mxu1 %v208_v30  ;;  %v92_v33 = vld [vmem:[%s1786_s0 + $0x270] sm:$0xff]  ;;  %v53_v30 = vld [vmem:[%s1786_s0 + $0x138] sm:$0xff] }
  0x59   :  { %328 = vmatmul.f32.gmra.mxu3 %v91_v52  ;;  %369 = vmatmul.f32.gmra.mxu0 %v36_v24 }
  0x5a   :  { %421 = vmatpush.msra.mxu0 %v1034_v36  ;;  %618 = vmatpush.msrb.mxu1 %v207_v54  ;;  %v98_v36 = vld [vmem:[%s1786_s0 + $0x2a0] sm:$0xff] }
  0x5c   :  { %422 = vmatpush.msra.mxu0 %v1049_v39  ;;  %458 = vmatmul.f32.gmra.mxu2 %v93_v27  ;;  %v16_v39 = vld [vmem:[%s1786_s0 + $0x10] sm:$0xff] }
  0x5d   :  { %619 = vmatpush.msrb.mxu1 %v206_v57  ;;  %v52_v27 = vld [vmem:[%s1786_s0 + $0x130] sm:$0xff] }
  0x5e   :  { %423 = vmatpush.msra.mxu0 %v1064_v42  ;;  %v100_v42 = vld [vmem:[%s1786_s0 + $0x2b0] sm:$0xff] }
  0x5f   :  { %393 = vmatmul.f32.gmra.mxu1 %v92_v33 }
  0x60   :  { %424 = vmatpush.msra.mxu0 %v1090_v48  ;;  %v99_v48 = vld [vmem:[%s1786_s0 + $0x2a8] sm:$0xff] }
  0x61   :  { %331 = vmatmul.f32.gmra.mxu3 %v98_v36  ;;  %425 = vmatmul.f32.vlgmr.msra.gmra.mxu0 %v16_v39  ;;  %v55_v36 = vld [vmem:[%s1786_s0 + $0x148] sm:$0xff] }
  0x62   :  { %539 = vmatpush.msrb.mxu0 %v205_v55 }
  0x64   :  { %461 = vmatmul.f32.gmra.mxu2 %v100_v42  ;;  %540 = vmatpush.msrb.mxu0 %v204_v56  ;;  %v54_v42 = vld [vmem:[%s1786_s0 + $0x140] sm:$0xff] }
  0x66   :  { %541 = vmatpush.msrb.mxu0 %v203_v58  ;;  %v59_v58 = vld [vmem:[%s1786_s0 + $0x168] sm:$0xff] }
  0x67   :  { %396 = vmatmul.f32.gmra.mxu1 %v99_v48  ;;  %v60_v48 = vld [vmem:[%s1786_s0 + $0x170] sm:$0xff] }
  0x68   :  { %542 = vmatpush.msrb.mxu0 %v202_v59 }
  0x69   :  { %334 = vmatmul.f32.gmra.mxu3 %v105_v60  ;;  %428 = vmatmul.f32.gmra.mxu0 %v23_v61 }
  0x6a   :  { %543 = vmatpush.msrb.mxu0 %v201_v62  ;;  %v62_v62 = vld [vmem:[%s1786_s0 + $0x180] sm:$0xff] }
  0x6c   :  { %464 = vmatmul.f32.gmra.mxu2 %v107_v63  ;;  %544 = vmatpush.msrb.mxu0 %v200_v0 }
  0x6e   :  { %545 = vmatpush.msrb.mxu0 %v199_v1  ;;  %v61_v1 = vld [vmem:[%s1786_s0 + $0x178] sm:$0xff] }
  0x6f   :  { %399 = vmatmul.f32.gmra.mxu1 %v106_v4 }
  0x70   :  { %546 = vmatpush.msrb.mxu0 %v198_v5 }
  0x71   :  { %337 = vmatmul.f32.gmra.mxu3 %v112_v7  ;;  %431 = vmatmul.f32.gmra.mxu0 %v30_v8  ;;  %v66_v7 = vld [vmem:[%s1786_s0 + $0x1a0] sm:$0xff]  ;;  %v67_v8 = vld [vmem:[%s1786_s0 + $0x1a8] sm:$0xff] }
  0x72   :  { %547 = vmatpush.msrb.mxu0 %v197_v10 }
  0x74   :  { %467 = vmatmul.f32.gmra.mxu2 %v114_v11  ;;  %548 = vmatpush.msrb.mxu0 %v196_v13 }
  0x76   :  { %549 = vmatpush.msrb.mxu0 %v195_v14  ;;  %v69_v14 = vld [vmem:[%s1786_s0 + $0x1b8] sm:$0xff] }
  0x77   :  { %402 = vmatmul.f32.gmra.mxu1 %v113_v16 }
  0x78   :  { %550 = vmatpush.msrb.mxu0 %v194_v17 }
  0x79   :  { %340 = vmatmul.f32.gmra.mxu3 %v119_v19  ;;  %434 = vmatmul.f32.gmra.mxu0 %v37_v20  ;;  %v68_v19 = vld [vmem:[%s1786_s0 + $0x1b0] sm:$0xff] }
  0x7a   :  { %551 = vmatpush.msrb.mxu0 %v193_v22 }
  0x7c   :  { %470 = vmatmul.f32.gmra.mxu2 %v121_v23  ;;  %552 = vmatpush.msrb.mxu0 %v192_v25  ;;  %v73_v23 = vld [vmem:[%s1786_s0 + $0x1d8] sm:$0xff]  ;;  %v74_v25 = vld [vmem:[%s1786_s0 + $0x1e0] sm:$0xff] }
  0x7e   :  { %553 = vmatpush.msrb.mxu0 %v191_v26 }
  0x7f   :  { %405 = vmatmul.f32.gmra.mxu1 %v120_v28 }
  0x80   :  { %554 = vmatpush.msrb.mxu0 %v190_v29 }
  0x81   :  { %490 = vmatmul.f32.vlgmr.msrb.gmra.mxu3 %v17_v31  ;;  %555 = vmatmul.f32.vlgmr.msrb.gmra.mxu0 %v18_v32  ;;  %v76_v31 = vld [vmem:[%s1786_s0 + $0x1f0] sm:$0xff] }
  0x84   :  { %771 = vmatmul.msk.f32.vlgmr.msrb.gmra.mxu2 %vm230_vm0, %v20_v34 }
  0x87   :  { %620 = vmatmul.f32.vlgmr.msrb.gmra.mxu1 %v19_v35  ;;  %v75_v35 = vld [vmem:[%s1786_s0 + $0x1e8] sm:$0xff] }
  0x89   :  { %493 = vmatmul.f32.gmra.mxu3 %v24_v37  ;;  %558 = vmatmul.f32.gmra.mxu0 %v25_v38 }
  0x8c   :  { %772 = vmatmul.msk.f32.gmra.mxu2 %vm230_vm0, %v27_v40  ;;  %v80_v40 = vld [vmem:[%s1786_s0 + $0x210] sm:$0xff] }
  0x8f   :  { %623 = vmatmul.f32.gmra.mxu1 %v26_v41  ;;  %v81_v41 = vld [vmem:[%s1786_s0 + $0x218] sm:$0xff] }
  0x91   :  { %496 = vmatmul.f32.gmra.mxu3 %v31_v43  ;;  %561 = vmatmul.f32.gmra.mxu0 %v32_v44 }
  0x94   :  { %773 = vmatmul.msk.f32.gmra.mxu2 %vm230_vm0, %v34_v2 }
  0x97   :  { %626 = vmatmul.f32.gmra.mxu1 %v33_v3  ;;  %v83_v3 = vld [vmem:[%s1786_s0 + $0x228] sm:$0xff] }
  0x99   :  { %499 = vmatmul.f32.gmra.mxu3 %v38_v45  ;;  %564 = vmatmul.f32.gmra.mxu0 %v39_v6 }
  0x9c   :  { %774 = vmatmul.msk.f32.gmra.mxu2 %vm230_vm0, %v41_v9  ;;  %v82_v9 = vld [vmem:[%s1786_s0 + $0x220] sm:$0xff] }
  0x9e   :  { %v1480_v47 = vpop.f32.mrf.mxu0 }
  0x9f   :  { %629 = vmatmul.f32.gmra.mxu1 %v40_v46 }
  0xa1   :  { %502 = vmatmul.f32.gmra.mxu3 %v45_v12  ;;  %567 = vmatmul.f32.gmra.mxu0 %v46_v15  ;;  %v87_v15 = vld [vmem:[%s1786_s0 + $0x248] sm:$0xff] }
  0xa4   :  { %v308_v18 = vpop.f32.mrf.mxu3  ;;  %v373_v21 = vpop.f32.mrf.mxu1  ;;  %775 = vmatmul.msk.f32.gmra.mxu2 %vm230_vm0, %v48_v50  ;;  %v88_v50 = vld [vmem:[%s1786_s0 + $0x250] sm:$0xff] }
  0xa5   :  { %v309_v52 = vadd.f32 %v1491_v49, %v308_v18 }
  0xa6   :  { %v1501_v24 = vpop.f32.mrf.mxu0 }
  0xa7   :  { %v374_v53 = vadd.f32 %v373_v21, %v309_v52  ;;  %v438_v33 = vpop.f32.mrf.mxu2  ;;  %632 = vmatmul.f32.gmra.mxu1 %v47_v51  ;;  %v90_v52 = vld [vmem:[%s1786_s0 + $0x260] sm:$0xff] }
  0xa9   :  { %v1509_v54 = vadd.f32 %v438_v33, %v374_v53  ;;  %505 = vmatmul.f32.gmra.mxu3 %v52_v27  ;;  %570 = vmatmul.f32.gmra.mxu0 %v53_v30  ;;  %v89_v53 = vld [vmem:[%s1786_s0 + $0x258] sm:$0xff] }
  0xac   :  { %v311_v39 = vpop.f32.mrf.mxu3  ;;  %v376_v55 = vpop.f32.mrf.mxu1  ;;  %776 = vmatmul.msk.f32.gmra.mxu2 %vm230_vm0, %v55_v36 }
  0xad   :  { %v312_v56 = vadd.f32 %v1491_v49, %v311_v39  ;;  %v94_v39 = vld [vmem:[%s1786_s0 + $0x280] sm:$0xff] }
  0xae   :  { %v1519_v57 = vpop.f32.mrf.mxu0 }
  0xaf   :  { %v377_v59 = vadd.f32 %v376_v55, %v312_v56  ;;  %v441_v60 = vpop.f32.mrf.mxu2  ;;  %635 = vmatmul.f32.gmra.mxu1 %v54_v42  ;;  %v95_v55 = vld [vmem:[%s1786_s0 + $0x288] sm:$0xff] }
  0xb1   :  { %v1527_v61 = vadd.f32 %v441_v60, %v377_v59  ;;  %508 = vmatmul.f32.gmra.mxu3 %v59_v58  ;;  %573 = vmatmul.f32.gmra.mxu0 %v60_v48  ;;  %v97_v48 = vld [vmem:[%s1786_s0 + $0x298] sm:$0xff] }
  0xb4   :  { %v314_v63 = vpop.f32.mrf.mxu3  ;;  %v379_v0 = vpop.f32.mrf.mxu1  ;;  %777 = vmatmul.msk.f32.gmra.mxu2 %vm230_vm0, %v62_v62  ;;  %v96_v62 = vld [vmem:[%s1786_s0 + $0x290] sm:$0xff] }
  0xb5   :  { %v315_v4 = vadd.f32 %v1491_v49, %v314_v63 }
  0xb6   :  { %v1537_v5 = vpop.f32.mrf.mxu0 }
  0xb7   :  { %v380_v10 = vadd.f32 %v379_v0, %v315_v4  ;;  %v444_v11 = vpop.f32.mrf.mxu2  ;;  %638 = vmatmul.f32.gmra.mxu1 %v61_v1  ;;  %v101_v1 = vld [vmem:[%s1786_s0 + $0x2b8] sm:$0xff]  ;;  %v102_v4 = vld [vmem:[%s1786_s0 + $0x2c0] sm:$0xff] }
  0xb9   :  { %v1545_v13 = vadd.f32 %v444_v11, %v380_v10  ;;  %511 = vmatmul.f32.gmra.mxu3 %v66_v7  ;;  %576 = vmatmul.f32.gmra.mxu0 %v67_v8  ;;  %v104_v11 = vld [vmem:[%s1786_s0 + $0x2d0] sm:$0xff] }
  0xbc   :  { %v317_v16 = vpop.f32.mrf.mxu3  ;;  %v382_v17 = vpop.f32.mrf.mxu1  ;;  %778 = vmatmul.msk.f32.gmra.mxu2 %vm230_vm0, %v69_v14 }
  0xbd   :  { %v318_v20 = vadd.f32 %v1491_v49, %v317_v16 }
  0xbe   :  { %v1555_v22 = vpop.f32.mrf.mxu0 }
  0xbf   :  { %v383_v26 = vadd.f32 %v382_v17, %v318_v20  ;;  %v447_v28 = vpop.f32.mrf.mxu2  ;;  %641 = vmatmul.f32.gmra.mxu1 %v68_v19  ;;  %v103_v17 = vld [vmem:[%s1786_s0 + $0x2c8] sm:$0xff] }
  0xc1   :  { %v1563_v29 = vadd.f32 %v447_v28, %v383_v26  ;;  %514 = vmatmul.f32.gmra.mxu3 %v73_v23  ;;  %579 = vmatmul.f32.gmra.mxu0 %v74_v25  ;;  %v108_v23 = vld [vmem:[%s1786_s0 + $0x2f0] sm:$0xff]  ;;  %v109_v25 = vld [vmem:[%s1786_s0 + $0x2f8] sm:$0xff] }
  0xc4   :  { %v320_v32 = vpop.f32.mrf.mxu3  ;;  %v385_v34 = vpop.f32.mrf.mxu1  ;;  %779 = vmatmul.msk.f32.gmra.mxu2 %vm230_vm0, %v76_v31 }
  0xc5   :  { %v321_v37 = vadd.f32 %v1491_v49, %v320_v32  ;;  %v111_v32 = vld [vmem:[%s1786_s0 + $0x308] sm:$0xff] }
  0xc6   :  { %v1573_v38 = vpop.f32.mrf.mxu0 }
  0xc7   :  { %v386_v43 = vadd.f32 %v385_v34, %v321_v37  ;;  %v450_v44 = vpop.f32.mrf.mxu2  ;;  %644 = vmatmul.f32.gmra.mxu1 %v75_v35  ;;  %v110_v37 = vld [vmem:[%s1786_s0 + $0x300] sm:$0xff] }
  0xc9   :  { %v1581_v2 = vadd.f32 %v450_v44, %v386_v43  ;;  %517 = vmatmul.f32.gmra.mxu3 %v80_v40  ;;  %582 = vmatmul.f32.gmra.mxu0 %v81_v41  ;;  %v115_v43 = vld [vmem:[%s1786_s0 + $0x328] sm:$0xff]  ;;  %v116_v44 = vld [vmem:[%s1786_s0 + $0x330] sm:$0xff] }
  0xcc   :  { %v323_v45 = vpop.f32.mrf.mxu3  ;;  %v388_v6 = vpop.f32.mrf.mxu1  ;;  %780 = vmatmul.msk.f32.gmra.mxu2 %vm230_vm0, %v83_v3 }
  0xcd   :  { %v324_v46 = vadd.f32 %v1491_v49, %v323_v45 }
  0xce   :  { %v1591_v12 = vpop.f32.mrf.mxu0 }
  0xcf   :  { %v389_v18 = vadd.f32 %v388_v6, %v324_v46  ;;  %v453_v21 = vpop.f32.mrf.mxu2  ;;  %647 = vmatmul.f32.gmra.mxu1 %v82_v9  ;;  %v118_v9 = vld [vmem:[%s1786_s0 + $0x340] sm:$0xff] }
  0xd1   :  { %v1599_v51 = vadd.f32 %v453_v21, %v389_v18  ;;  %520 = vmatmul.f32.gmra.mxu3 %v87_v15  ;;  %585 = vmatmul.f32.gmra.mxu0 %v88_v50  ;;  %v117_v50 = vld [vmem:[%s1786_s0 + $0x338] sm:$0xff] }
  0xd4   :  { %v326_v27 = vpop.f32.mrf.mxu3  ;;  %v391_v30 = vpop.f32.mrf.mxu1  ;;  %781 = vmatmul.msk.f32.gmra.mxu2 %vm230_vm0, %v90_v52  ;;  %v122_v52 = vld [vmem:[%s1786_s0 + $0x360] sm:$0xff] }
  0xd5   :  { %v327_v33 = vadd.f32 %v1491_v49, %v326_v27  ;;  %v123_v27 = vld [vmem:[%s1786_s0 + $0x368] sm:$0xff] }
  0xd6   :  { %v1609_v36 = vpop.f32.mrf.mxu0 }
  0xd7   :  { %v392_v42 = vadd.f32 %v391_v30, %v327_v33  ;;  %v456_v56 = vpop.f32.mrf.mxu2  ;;  %650 = vmatmul.f32.gmra.mxu1 %v89_v53 }
  0xd9   :  { %v1617_v58 = vadd.f32 %v456_v56, %v392_v42  ;;  %523 = vmatmul.f32.gmra.mxu3 %v94_v39  ;;  %588 = vmatmul.f32.gmra.mxu0 %v95_v55  ;;  %v125_v39 = vld [vmem:[%s1786_s0 + $0x378] sm:$0xff]  ;;  %v124_v56 = vld [vmem:[%s1786_s0 + $0x370] sm:$0xff] }
  0xdc   :  { %v329_v59 = vpop.f32.mrf.mxu3  ;;  %v394_v60 = vpop.f32.mrf.mxu1  ;;  %782 = vmatmul.msk.f32.gmra.mxu2 %vm230_vm0, %v97_v48 }
  0xdd   :  { %v330_v63 = vadd.f32 %v1491_v49, %v329_v59 }
  0xde   :  { %v1627_v0 = vpop.f32.mrf.mxu0 }
  0xdf   :  { %v395_v7 = vadd.f32 %v394_v60, %v330_v63  ;;  %v459_v8 = vpop.f32.mrf.mxu2  ;;  %653 = vmatmul.f32.gmra.mxu1 %v96_v62  ;;  %v297_v60 = vadd.f32 %v1491_v49, %v1480_v47 }
  0xe1   :  { %v1635_v10 = vadd.f32 %v459_v8, %v395_v7  ;;  %526 = vmatmul.f32.gmra.mxu3 %v101_v1  ;;  %591 = vmatmul.f32.gmra.mxu0 %v102_v4  ;;  %v362_v1 = vadd.f32 %v1555_v22, %v297_v60 }
  0xe3   :  { %v427_v7 = vadd.f32 %v1627_v0, %v362_v1 }
  0xe4   :  { %v332_v14 = vpop.f32.mrf.mxu3  ;;  %v397_v16 = vpop.f32.mrf.mxu1  ;;  %783 = vmatmul.msk.f32.gmra.mxu2 %vm230_vm0, %v104_v11 }
  0xe5   :  { %v333_v19 = vadd.f32 %v1491_v49, %v332_v14 }
  0xe6   :  { %v429_v20 = vpop.f32.mrf.mxu0 }
  0xe7   :  { %v398_v26 = vadd.f32 %v397_v16, %v333_v19  ;;  %v462_v28 = vpop.f32.mrf.mxu2  ;;  %656 = vmatmul.f32.gmra.mxu1 %v103_v17  ;;  %v300_v17 = vadd.f32 %v1491_v49, %v1501_v24 }
  0xe9   :  { %v1651_v31 = vadd.f32 %v462_v28, %v398_v26  ;;  %529 = vmatmul.f32.gmra.mxu3 %v108_v23  ;;  %594 = vmatmul.f32.gmra.mxu0 %v109_v25  ;;  %v365_v47 = vadd.f32 %v1573_v38, %v300_v17 }
  0xeb   :  { %v430_v26 = vadd.f32 %v429_v20, %v365_v47 }
  0xec   :  { %v335_v34 = vpop.f32.mrf.mxu3  ;;  %v400_v35 = vpop.f32.mrf.mxu1  ;;  %784 = vmatmul.msk.f32.gmra.mxu2 %vm230_vm0, %v111_v32 }
  0xed   :  { %v336_v40 = vadd.f32 %v1491_v49, %v335_v34 }
  0xee   :  { %v432_v41 = vpop.f32.mrf.mxu0 }
  0xef   :  { %v401_v3 = vadd.f32 %v400_v35, %v336_v40  ;;  %v465_v45 = vpop.f32.mrf.mxu2  ;;  %659 = vmatmul.f32.gmra.mxu1 %v110_v37  ;;  %v303_v37 = vadd.f32 %v1491_v49, %v1519_v57  ;;  %v306_v57 = vadd.f32 %v1491_v49, %v1537_v5 }
  0xf1   :  { %v1667_v6 = vadd.f32 %v465_v45, %v401_v3  ;;  %532 = vmatmul.f32.gmra.mxu3 %v115_v43  ;;  %597 = vmatmul.f32.gmra.mxu0 %v116_v44  ;;  %v368_v38 = vadd.f32 %v1591_v12, %v303_v37  ;;  %v371_v12 = vadd.f32 %v1609_v36, %v306_v57 }
  0xf3   :  { %v433_v43 = vadd.f32 %v432_v41, %v368_v38 }
  0xf4   :  { %v338_v46 = vpop.f32.mrf.mxu3  ;;  %v403_v15 = vpop.f32.mrf.mxu1  ;;  %785 = vmatmul.msk.f32.gmra.mxu2 %vm230_vm0, %v118_v9 }
  0xf5   :  { %v339_v18 = vadd.f32 %v1491_v49, %v338_v46 }
  0xf6   :  { %v435_v21 = vpop.f32.mrf.mxu0 }
  0xf7   :  { %v404_v30 = vadd.f32 %v403_v15, %v339_v18  ;;  %v468_v53 = vpop.f32.mrf.mxu2  ;;  %662 = vmatmul.f32.gmra.mxu1 %v117_v50  ;;  %v436_v41 = vadd.f32 %v435_v21, %v371_v12 }
  0xf9   :  { %v1683_v33 = vadd.f32 %v468_v53, %v404_v30  ;;  %535 = vmatmul.f32.gmra.mxu3 %v122_v52  ;;  %600 = vmatmul.f32.gmra.mxu0 %v123_v27 }
  0xfc   :  { %v341_v55 = vpop.f32.mrf.mxu3  ;;  %v406_v42 = vpop.f32.mrf.mxu1  ;;  %786 = vmatmul.msk.f32.gmra.mxu2 %vm230_vm0, %v125_v39 }
  0xfd   :  { %v342_v48 = vadd.f32 %v1491_v49, %v341_v55 }
  0xfe   :  { %v556_v59 = vpop.f32.mrf.mxu0 }
  0xff   :  { %v407_v62 = vadd.f32 %v406_v42, %v342_v48  ;;  %v471_v63 = vpop.f32.mrf.mxu2  ;;  %665 = vmatmul.f32.gmra.mxu1 %v124_v56 }
 0x101   :  { %v1696_v4 = vadd.f32 %v471_v63, %v407_v62 }
 0x104   :  { %v491_v8 = vpop.f32.mrf.mxu3  ;;  %v621_v11 = vpop.f32.mrf.mxu1 }
 0x105   :  { %v492_v14 = vadd.f32 %v491_v8, %v427_v7 }
 0x106   :  { %v559_v16 = vpop.f32.mrf.mxu0 }
 0x107   :  { %v557_v19 = vadd.f32 %v556_v59, %v492_v14  ;;  %v686_v23 = vpop.f32.mrf.mxu2 }
 0x109   :  { %v622_v25 = vadd.f32 %v621_v11, %v557_v19 }
 0x10b   :  { %v687_v28 = vadd.f32 %v686_v23, %v622_v25 }
 0x10c   :  { %v494_v22 = vpop.f32.mrf.mxu3  ;;  %v624_v32 = vpop.f32.mrf.mxu1 }
 0x10d   :  { %v734_v34 = vmax.f32 %v687_v28, 0.0  ;;  %v495_v35 = vadd.f32 %v494_v22, %v430_v26 }
 0x10e   :  { %v562_v0 = vpop.f32.mrf.mxu0 }
 0x10f   :  { %751 = vst.msk [vmem:[%s1787_s3] sm:$0xff] %vm750_vm1, %v734_v34  ;;  %v560_v24 = vadd.f32 %v559_v16, %v495_v35  ;;  %v689_v40 = vpop.f32.mrf.mxu2 }
 0x111   :  { %v625_v20 = vadd.f32 %v624_v32, %v560_v24 }
 0x113   :  { %v690_v44 = vadd.f32 %v689_v40, %v625_v20 }
 0x114   :  { %v497_v3 = vpop.f32.mrf.mxu3  ;;  %v627_v45 = vpop.f32.mrf.mxu1 }
 0x115   :  { %v735_v9 = vmax.f32 %v690_v44, 0.0  ;;  %v498_v46 = vadd.f32 %v497_v3, %v433_v43 }
 0x116   :  { %v565_v15 = vpop.f32.mrf.mxu0 }
 0x117   :  { %752 = vst.msk [vmem:[%s1787_s3 + $0x8] sm:$0xff] %vm750_vm1, %v735_v9  ;;  %v563_v50 = vadd.f32 %v562_v0, %v498_v46  ;;  %v692_v18 = vpop.f32.mrf.mxu2 }
 0x119   :  { %v628_v52 = vadd.f32 %v627_v45, %v563_v50 }
 0x11b   :  { %v693_v27 = vadd.f32 %v692_v18, %v628_v52 }
 0x11c   :  { %v500_v30 = vpop.f32.mrf.mxu3  ;;  %v630_v53 = vpop.f32.mrf.mxu1 }
 0x11d   :  { %v736_v39 = vmax.f32 %v693_v27, 0.0  ;;  %v501_v55 = vadd.f32 %v500_v30, %v436_v41 }
 0x11e   :  { %v568_v42 = vpop.f32.mrf.mxu0 }
 0x11f   :  { %753 = vst.msk [vmem:[%s1787_s3 + $0x10] sm:$0xff] %vm750_vm1, %v736_v39  ;;  %v566_v49 = vadd.f32 %v565_v15, %v501_v55  ;;  %v695_v5 = vpop.f32.mrf.mxu2 }
 0x121   :  { %v631_v56 = vadd.f32 %v630_v53, %v566_v49 }
 0x123   :  { %v696_v48 = vadd.f32 %v695_v5, %v631_v56 }
 0x124   :  { %v503_v59 = vpop.f32.mrf.mxu3  ;;  %v633_v60 = vpop.f32.mrf.mxu1 }
 0x125   :  { %v737_v36 = vmax.f32 %v696_v48, 0.0  ;;  %v504_v21 = vadd.f32 %v503_v59, %v1509_v54 }
 0x126   :  { %v571_v62 = vpop.f32.mrf.mxu0 }
 0x127   :  { %754 = vst.msk [vmem:[%s1787_s3 + $0x18] sm:$0xff] %vm750_vm1, %v737_v36  ;;  %v569_v63 = vadd.f32 %v568_v42, %v504_v21  ;;  %v698_v1 = vpop.f32.mrf.mxu2 }
 0x129   :  { %v634_v7 = vadd.f32 %v633_v60, %v569_v63 }
 0x12b   :  { %v699_v8 = vadd.f32 %v698_v1, %v634_v7 }
 0x12c   :  { %v506_v11 = vpop.f32.mrf.mxu3  ;;  %v636_v14 = vpop.f32.mrf.mxu1 }
 0x12d   :  { %v738_v16 = vmax.f32 %v699_v8, 0.0  ;;  %v507_v17 = vadd.f32 %v506_v11, %v1527_v61 }
 0x12e   :  { %v574_v19 = vpop.f32.mrf.mxu0 }
 0x12f   :  { %755 = vst.msk [vmem:[%s1787_s3 + $0x20] sm:$0xff] %vm750_vm1, %v738_v16  ;;  %v572_v54 = vadd.f32 %v571_v62, %v507_v17  ;;  %v701_v23 = vpop.f32.mrf.mxu2 }
 0x131   :  { %v637_v47 = vadd.f32 %v636_v14, %v572_v54 }
 0x133   :  { %v702_v25 = vadd.f32 %v701_v23, %v637_v47 }
 0x134   :  { %v509_v26 = vpop.f32.mrf.mxu3  ;;  %v639_v28 = vpop.f32.mrf.mxu1 }
 0x135   :  { %v739_v22 = vmax.f32 %v702_v25, 0.0  ;;  %v510_v32 = vadd.f32 %v509_v26, %v1545_v13 }
 0x136   :  { %v577_v34 = vpop.f32.mrf.mxu0 }
 0x137   :  { %756 = vst.msk [vmem:[%s1787_s3 + $0x28] sm:$0xff] %vm750_vm1, %v739_v22  ;;  %v575_v61 = vadd.f32 %v574_v19, %v510_v32  ;;  %v704_v35 = vpop.f32.mrf.mxu2 }
 0x139   :  { %v640_v0 = vadd.f32 %v639_v28, %v575_v61 }
 0x13b   :  { %v705_v37 = vadd.f32 %v704_v35, %v640_v0 }
 0x13c   :  { %v512_v24 = vpop.f32.mrf.mxu3  ;;  %v642_v40 = vpop.f32.mrf.mxu1 }
 0x13d   :  { %v740_v38 = vmax.f32 %v705_v37, 0.0  ;;  %v513_v20 = vadd.f32 %v512_v24, %v1563_v29 }
 0x13e   :  { %v580_v43 = vpop.f32.mrf.mxu0 }
 0x13f   :  { %757 = vst.msk [vmem:[%s1787_s3 + $0x30] sm:$0xff] %vm750_vm1, %v740_v38  ;;  %v578_v13 = vadd.f32 %v577_v34, %v513_v20  ;;  %v707_v44 = vpop.f32.mrf.mxu2 }
 0x141   :  { %v643_v3 = vadd.f32 %v642_v40, %v578_v13 }
 0x143   :  { %v708_v45 = vadd.f32 %v707_v44, %v643_v3 }
 0x144   :  { %v515_v9 = vpop.f32.mrf.mxu3  ;;  %v645_v46 = vpop.f32.mrf.mxu1 }
 0x145   :  { %v741_v15 = vmax.f32 %v708_v45, 0.0  ;;  %v516_v57 = vadd.f32 %v515_v9, %v1581_v2 }
 0x146   :  { %v583_v50 = vpop.f32.mrf.mxu0 }
 0x147   :  { %758 = vst.msk [vmem:[%s1787_s3 + $0x38] sm:$0xff] %vm750_vm1, %v741_v15  ;;  %v581_v29 = vadd.f32 %v580_v43, %v516_v57  ;;  %v710_v18 = vpop.f32.mrf.mxu2 }
 0x149   :  { %v646_v12 = vadd.f32 %v645_v46, %v581_v29 }
 0x14b   :  { %v711_v52 = vadd.f32 %v710_v18, %v646_v12 }
 0x14c   :  { %v518_v41 = vpop.f32.mrf.mxu3  ;;  %v648_v27 = vpop.f32.mrf.mxu1 }
 0x14d   :  { %v742_v30 = vmax.f32 %v711_v52, 0.0  ;;  %v519_v53 = vadd.f32 %v518_v41, %v1599_v51 }
 0x14e   :  { %v586_v39 = vpop.f32.mrf.mxu0 }
 0x14f   :  { %759 = vst.msk [vmem:[%s1787_s3 + $0x40] sm:$0xff] %vm750_vm1, %v742_v30  ;;  %v584_v2 = vadd.f32 %v583_v50, %v519_v53  ;;  %v713_v55 = vpop.f32.mrf.mxu2 }
 0x151   :  { %v649_v42 = vadd.f32 %v648_v27, %v584_v2 }
 0x153   :  { %v714_v49 = vadd.f32 %v713_v55, %v649_v42 }
 0x154   :  { %v521_v5 = vpop.f32.mrf.mxu3  ;;  %v651_v56 = vpop.f32.mrf.mxu1 }
 0x155   :  { %v743_v48 = vmax.f32 %v714_v49, 0.0  ;;  %v522_v59 = vadd.f32 %v521_v5, %v1617_v58 }
 0x156   :  { %v589_v60 = vpop.f32.mrf.mxu0 }
 0x157   :  { %760 = vst.msk [vmem:[%s1787_s3 + $0x48] sm:$0xff] %vm750_vm1, %v743_v48  ;;  %v587_v51 = vadd.f32 %v586_v39, %v522_v59  ;;  %v716_v36 = vpop.f32.mrf.mxu2 }
 0x159   :  { %v652_v21 = vadd.f32 %v651_v56, %v587_v51 }
 0x15b   :  { %v717_v62 = vadd.f32 %v716_v36, %v652_v21 }
 0x15c   :  { %v524_v63 = vpop.f32.mrf.mxu3  ;;  %v654_v1 = vpop.f32.mrf.mxu1 }
 0x15d   :  { %v744_v7 = vmax.f32 %v717_v62, 0.0  ;;  %v525_v8 = vadd.f32 %v524_v63, %v1635_v10 }
 0x15e   :  { %v592_v11 = vpop.f32.mrf.mxu0 }
 0x15f   :  { %761 = vst.msk [vmem:[%s1787_s3 + $0x50] sm:$0xff] %vm750_vm1, %v744_v7  ;;  %v590_v58 = vadd.f32 %v589_v60, %v525_v8  ;;  %v719_v14 = vpop.f32.mrf.mxu2 }
 0x161   :  { %v655_v16 = vadd.f32 %v654_v1, %v590_v58 }
 0x163   :  { %v720_v17 = vadd.f32 %v719_v14, %v655_v16 }
 0x164   :  { %v527_v19 = vpop.f32.mrf.mxu3  ;;  %v657_v54 = vpop.f32.mrf.mxu1 }
 0x165   :  { %v745_v23 = vmax.f32 %v720_v17, 0.0  ;;  %v528_v47 = vadd.f32 %v527_v19, %v1651_v31 }
 0x166   :  { %v595_v26 = vpop.f32.mrf.mxu0 }
 0x167   :  { %762 = vst.msk [vmem:[%s1787_s3 + $0x58] sm:$0xff] %vm750_vm1, %v745_v23  ;;  %v593_v10 = vadd.f32 %v592_v11, %v528_v47  ;;  %v722_v25 = vpop.f32.mrf.mxu2 }
 0x169   :  { %v658_v28 = vadd.f32 %v657_v54, %v593_v10 }
 0x16b   :  { %v723_v22 = vadd.f32 %v722_v25, %v658_v28 }
 0x16c   :  { %v530_v32 = vpop.f32.mrf.mxu3  ;;  %v660_v34 = vpop.f32.mrf.mxu1 }
 0x16d   :  { %v746_v61 = vmax.f32 %v723_v22, 0.0  ;;  %v531_v35 = vadd.f32 %v530_v32, %v1667_v6 }
 0x16e   :  { %v598_v24 = vpop.f32.mrf.mxu0 }
 0x16f   :  { %763 = vst.msk [vmem:[%s1787_s3 + $0x60] sm:$0xff] %vm750_vm1, %v746_v61  ;;  %v596_v31 = vadd.f32 %v595_v26, %v531_v35  ;;  %v725_v0 = vpop.f32.mrf.mxu2 }
 0x171   :  { %v661_v37 = vadd.f32 %v660_v34, %v596_v31 }
 0x173   :  { %v726_v40 = vadd.f32 %v725_v0, %v661_v37 }
 0x174   :  { %v533_v38 = vpop.f32.mrf.mxu3  ;;  %v663_v20 = vpop.f32.mrf.mxu1 }
 0x175   :  { %v747_v43 = vmax.f32 %v726_v40, 0.0  ;;  %v534_v13 = vadd.f32 %v533_v38, %v1683_v33 }
 0x176   :  { %v601_v46 = vpop.f32.mrf.mxu0 }
 0x177   :  { %764 = vst.msk [vmem:[%s1787_s3 + $0x68] sm:$0xff] %vm750_vm1, %v747_v43  ;;  %v599_v6 = vadd.f32 %v598_v24, %v534_v13  ;;  %v728_v44 = vpop.f32.mrf.mxu2 }
 0x179   :  { %v664_v3 = vadd.f32 %v663_v20, %v599_v6 }
 0x17b   :  { %v729_v45 = vadd.f32 %v728_v44, %v664_v3 }
 0x17c   :  { %v536_v9 = vpop.f32.mrf.mxu3  ;;  %v666_v50 = vpop.f32.mrf.mxu1 }
 0x17d   :  { %v748_v15 = vmax.f32 %v729_v45, 0.0  ;;  %v537_v57 = vadd.f32 %v536_v9, %v1696_v4 }
 0x17f   :  { %765 = vst.msk [vmem:[%s1787_s3 + $0x70] sm:$0xff] %vm750_vm1, %v748_v15  ;;  %v602_v33 = vadd.f32 %v601_v46, %v537_v57  ;;  %v731_v29 = vpop.f32.mrf.mxu2 }
 0x181   :  { %v667_v18 = vadd.f32 %v666_v50, %v602_v33 }
 0x183   :  { %v732_v12 = vadd.f32 %v731_v29, %v667_v18 }
 0x185   :  { %v749_v52 = vmax.f32 %v732_v12, 0.0 }
 0x187   :  { %766 = vst.msk [vmem:[%s1787_s3 + $0x78] sm:$0xff] %vm750_vm1, %v749_v52 }

// kernel: simple_cnn_forward.8
= control target key start
LH: loop header
LB: loop body
LE: loop exit
PB: predicated region body
PF: predicated region fallthrough
CT: control target
= control target key end

     0   :  { %s92_s0 = inlined_call_operand.vmem [shape: f32[8,256], index: 0, kind: input, shape index: {}]   ;;  %s93_s1 = inlined_call_operand.vmem [shape: f32[8,256], index: 1, kind: input, shape index: {}]   ;;  %s94_s2 = inlined_call_operand.vmem [shape: f32[8,256], index: 2, kind: input, shape index: {}]   ;;  %s95_s3 = inlined_call_operand.vmem [shape: f32[8,256], index: 3, kind: input, shape index: {}]   ;;  %s96_s4 = inlined_call_operand.vmem [shape: f32[8,256], index: 4, kind: output, shape index: {}]  }
   0x1   :  { %v17_v0 = vld [vmem:[%s92_s0] sm:$0xff]  ;;  %v18_v5 = vld [vmem:[%s92_s0 + $0x8] sm:$0xff] }
   0x2   :  { %v19_v1 = vld [vmem:[%s93_s1] sm:$0xff]  ;;  %v20_v6 = vld [vmem:[%s93_s1 + $0x8] sm:$0xff] }
   0x3   :  { %v23_v2 = vld [vmem:[%s94_s2] sm:$0xff]  ;;  %v21_v3 = vmax.f32 %v17_v0, %v19_v1  ;;  %v22_v8 = vmax.f32 %v18_v5, %v20_v6  ;;  %v24_v9 = vld [vmem:[%s94_s2 + $0x8] sm:$0xff] }
   0x4   :  { %v25_v4 = vld [vmem:[%s95_s3] sm:$0xff]  ;;  %v26_v10 = vld [vmem:[%s95_s3 + $0x8] sm:$0xff] }
   0x5   :  { %v27_v7 = vmax.f32 %v23_v2, %v25_v4  ;;  %v28_v11 = vmax.f32 %v24_v9, %v26_v10 }
   0x7   :  { %v29_v12 = vmax.f32 %v21_v3, %v27_v7  ;;  %v30_v13 = vmax.f32 %v22_v8, %v28_v11 }
   0x9   :  { %31 = vst [vmem:[%s96_s4] sm:$0xff] %v29_v12 }
   0xa   :  { %32 = vst [vmem:[%s96_s4 + $0x8] sm:$0xff] %v30_v13 }

// kernel: simple_cnn_forward.9
= control target key start
LH: loop header
LB: loop body
LE: loop exit
PB: predicated region body
PF: predicated region fallthrough
CT: control target
= control target key end

     0   :  { %s933_s0 = inlined_call_operand.vmem [shape: f32[2,1024], index: 0, kind: input, shape index: {}]   ;;  %s934_s1 = inlined_call_operand.vmem [shape: f32[1024,128], index: 1, kind: input, shape index: {}]   ;;  %s935_s2 = inlined_call_operand.vmem [shape: f32[1,128], index: 2, kind: input, shape index: {}]   ;;  %s936_s3 = inlined_call_operand.vmem [shape: f32[128,10], index: 3, kind: input, shape index: {}]   ;;  %s937_s4 = inlined_call_operand.vmem [shape: f32[1,10], index: 4, kind: input, shape index: {}]   ;;  %s938_s5 = inlined_call_operand.hbm [shape: f32[2,10], index: 5, kind: output, shape index: {}]  }
   0x1   :  { %v70_v0 = vld [vmem:[%s934_s1 + $0x178] sm:$0xff]  ;;  %v69_v2 = vld [vmem:[%s934_s1 + $0x170] sm:$0xff]  ;;  %v68_v6 = vld [vmem:[%s934_s1 + $0x168] sm:$0xff] }
   0x2   :  { %v38_v1 = vld [vmem:[%s934_s1 + $0x78] sm:$0xff]  ;;  %216 = vmatpush.msra.mxu2 %v70_v0  ;;  %v37_v4 = vld [vmem:[%s934_s1 + $0x70] sm:$0xff]  ;;  %v36_v8 = vld [vmem:[%s934_s1 + $0x68] sm:$0xff] }
   0x3   :  { %176 = vmatpush.msra.mxu0 %v38_v1  ;;  %v86_v3 = vld [vmem:[%s934_s1 + $0x1f8] sm:$0xff]  ;;  %v85_v7 = vld [vmem:[%s934_s1 + $0x1f0] sm:$0xff]  ;;  %v84_v10 = vld [vmem:[%s934_s1 + $0x1e8] sm:$0xff] }
   0x4   :  { %v54_v5 = vld [vmem:[%s934_s1 + $0xf8] sm:$0xff]  ;;  %236 = vmatpush.msra.mxu3 %v86_v3  ;;  %217 = vmatpush.msra.mxu2 %v69_v2  ;;  %v53_v9 = vld [vmem:[%s934_s1 + $0xf0] sm:$0xff]  ;;  %v67_v11 = vld [vmem:[%s934_s1 + $0x160] sm:$0xff] }
   0x5   :  { %196 = vmatpush.msra.mxu1 %v54_v5  ;;  %177 = vmatpush.msra.mxu0 %v37_v4  ;;  %v35_v12 = vld [vmem:[%s934_s1 + $0x60] sm:$0xff]  ;;  %v52_v13 = vld [vmem:[%s934_s1 + $0xe8] sm:$0xff]  ;;  %v66_v16 = vld [vmem:[%s934_s1 + $0x158] sm:$0xff] }
   0x6   :  { %237 = vmatpush.msra.mxu3 %v85_v7  ;;  %218 = vmatpush.msra.mxu2 %v68_v6  ;;  %v83_v14 = vld [vmem:[%s934_s1 + $0x1e0] sm:$0xff]  ;;  %v34_v17 = vld [vmem:[%s934_s1 + $0x58] sm:$0xff]  ;;  %v65_v20 = vld [vmem:[%s934_s1 + $0x150] sm:$0xff] }
   0x7   :  { %197 = vmatpush.msra.mxu1 %v53_v9  ;;  %178 = vmatpush.msra.mxu0 %v36_v8  ;;  %v51_v15 = vld [vmem:[%s934_s1 + $0xe0] sm:$0xff]  ;;  %v82_v18 = vld [vmem:[%s934_s1 + $0x1d8] sm:$0xff]  ;;  %v33_v21 = vld [vmem:[%s934_s1 + $0x50] sm:$0xff] }
   0x8   :  { %238 = vmatpush.msra.mxu3 %v84_v10  ;;  %219 = vmatpush.msra.mxu2 %v67_v11  ;;  %v50_v19 = vld [vmem:[%s934_s1 + $0xd8] sm:$0xff]  ;;  %v81_v22 = vld [vmem:[%s934_s1 + $0x1d0] sm:$0xff]  ;;  %v64_v24 = vld [vmem:[%s934_s1 + $0x148] sm:$0xff] }
   0x9   :  { %198 = vmatpush.msra.mxu1 %v52_v13  ;;  %179 = vmatpush.msra.mxu0 %v35_v12  ;;  %v49_v23 = vld [vmem:[%s934_s1 + $0xd0] sm:$0xff]  ;;  %v32_v25 = vld [vmem:[%s934_s1 + $0x48] sm:$0xff]  ;;  %v63_v28 = vld [vmem:[%s934_s1 + $0x140] sm:$0xff] }
   0xa   :  { %239 = vmatpush.msra.mxu3 %v83_v14  ;;  %220 = vmatpush.msra.mxu2 %v66_v16  ;;  %v80_v26 = vld [vmem:[%s934_s1 + $0x1c8] sm:$0xff]  ;;  %v31_v29 = vld [vmem:[%s934_s1 + $0x40] sm:$0xff]  ;;  %v62_v32 = vld [vmem:[%s934_s1 + $0x138] sm:$0xff] }
   0xb   :  { %199 = vmatpush.msra.mxu1 %v51_v15  ;;  %180 = vmatpush.msra.mxu0 %v34_v17  ;;  %v48_v27 = vld [vmem:[%s934_s1 + $0xc8] sm:$0xff]  ;;  %v79_v30 = vld [vmem:[%s934_s1 + $0x1c0] sm:$0xff]  ;;  %v30_v33 = vld [vmem:[%s934_s1 + $0x38] sm:$0xff] }
   0xc   :  { %240 = vmatpush.msra.mxu3 %v82_v18  ;;  %221 = vmatpush.msra.mxu2 %v65_v20  ;;  %v47_v31 = vld [vmem:[%s934_s1 + $0xc0] sm:$0xff]  ;;  %v78_v34 = vld [vmem:[%s934_s1 + $0x1b8] sm:$0xff]  ;;  %v61_v36 = vld [vmem:[%s934_s1 + $0x130] sm:$0xff] }
   0xd   :  { %200 = vmatpush.msra.mxu1 %v50_v19  ;;  %181 = vmatpush.msra.mxu0 %v33_v21  ;;  %v46_v35 = vld [vmem:[%s934_s1 + $0xb8] sm:$0xff]  ;;  %v29_v37 = vld [vmem:[%s934_s1 + $0x30] sm:$0xff]  ;;  %v60_v40 = vld [vmem:[%s934_s1 + $0x128] sm:$0xff] }
   0xe   :  { %241 = vmatpush.msra.mxu3 %v81_v22  ;;  %222 = vmatpush.msra.mxu2 %v64_v24  ;;  %v77_v38 = vld [vmem:[%s934_s1 + $0x1b0] sm:$0xff]  ;;  %v28_v41 = vld [vmem:[%s934_s1 + $0x28] sm:$0xff]  ;;  %v59_v44 = vld [vmem:[%s934_s1 + $0x120] sm:$0xff] }
   0xf   :  { %201 = vmatpush.msra.mxu1 %v49_v23  ;;  %182 = vmatpush.msra.mxu0 %v32_v25  ;;  %v45_v39 = vld [vmem:[%s934_s1 + $0xb0] sm:$0xff]  ;;  %v76_v42 = vld [vmem:[%s934_s1 + $0x1a8] sm:$0xff]  ;;  %v27_v45 = vld [vmem:[%s934_s1 + $0x20] sm:$0xff] }
  0x10   :  { %242 = vmatpush.msra.mxu3 %v80_v26  ;;  %223 = vmatpush.msra.mxu2 %v63_v28  ;;  %v44_v43 = vld [vmem:[%s934_s1 + $0xa8] sm:$0xff]  ;;  %v75_v46 = vld [vmem:[%s934_s1 + $0x1a0] sm:$0xff]  ;;  %v58_v48 = vld [vmem:[%s934_s1 + $0x118] sm:$0xff] }
  0x11   :  { %202 = vmatpush.msra.mxu1 %v48_v27  ;;  %183 = vmatpush.msra.mxu0 %v31_v29  ;;  %v43_v47 = vld [vmem:[%s934_s1 + $0xa0] sm:$0xff]  ;;  %v26_v49 = vld [vmem:[%s934_s1 + $0x18] sm:$0xff]  ;;  %v57_v52 = vld [vmem:[%s934_s1 + $0x110] sm:$0xff] }
  0x12   :  { %243 = vmatpush.msra.mxu3 %v79_v30  ;;  %224 = vmatpush.msra.mxu2 %v62_v32  ;;  %v74_v50 = vld [vmem:[%s934_s1 + $0x198] sm:$0xff]  ;;  %v25_v53 = vld [vmem:[%s934_s1 + $0x10] sm:$0xff]  ;;  %v56_v56 = vld [vmem:[%s934_s1 + $0x108] sm:$0xff] }
  0x13   :  { %203 = vmatpush.msra.mxu1 %v47_v31  ;;  %184 = vmatpush.msra.mxu0 %v30_v33  ;;  %v42_v51 = vld [vmem:[%s934_s1 + $0x98] sm:$0xff]  ;;  %v73_v54 = vld [vmem:[%s934_s1 + $0x190] sm:$0xff]  ;;  %v24_v57 = vld [vmem:[%s934_s1 + $0x8] sm:$0xff] }
  0x14   :  { %244 = vmatpush.msra.mxu3 %v78_v34  ;;  %225 = vmatpush.msra.mxu2 %v61_v36  ;;  %v41_v55 = vld [vmem:[%s934_s1 + $0x90] sm:$0xff]  ;;  %v72_v58 = vld [vmem:[%s934_s1 + $0x188] sm:$0xff]  ;;  %v55_v60 = vld [vmem:[%s934_s1 + $0x100] sm:$0xff] }
  0x15   :  { %204 = vmatpush.msra.mxu1 %v46_v35  ;;  %185 = vmatpush.msra.mxu0 %v29_v37  ;;  %v40_v59 = vld [vmem:[%s934_s1 + $0x88] sm:$0xff]  ;;  %v23_v61 = vld [vmem:[%s934_s1] sm:$0xff]  ;;  %v134_v62 = vld [vmem:[%s934_s1 + $0x378] sm:$0xff] }
  0x16   :  { %245 = vmatpush.msra.mxu3 %v77_v38  ;;  %226 = vmatpush.msra.mxu2 %v60_v40  ;;  %v71_v63 = vld [vmem:[%s934_s1 + $0x180] sm:$0xff]  ;;  %v102_v0 = vld [vmem:[%s934_s1 + $0x278] sm:$0xff]  ;;  %v133_v2 = vld [vmem:[%s934_s1 + $0x370] sm:$0xff] }
  0x17   :  { %205 = vmatpush.msra.mxu1 %v45_v39  ;;  %186 = vmatpush.msra.mxu0 %v28_v41  ;;  %v150_v1 = vld [vmem:[%s934_s1 + $0x3f8] sm:$0xff]  ;;  %v39_v3 = vld [vmem:[%s934_s1 + $0x80] sm:$0xff]  ;;  %v101_v4 = vld [vmem:[%s934_s1 + $0x270] sm:$0xff] }
  0x18   :  { %246 = vmatpush.msra.mxu3 %v76_v42  ;;  %227 = vmatpush.msra.mxu2 %v59_v44  ;;  %v118_v5 = vld [vmem:[%s934_s1 + $0x2f8] sm:$0xff]  ;;  %v132_v6 = vld [vmem:[%s934_s1 + $0x368] sm:$0xff]  ;;  %v149_v7 = vld [vmem:[%s934_s1 + $0x3f0] sm:$0xff] }
  0x19   :  { %206 = vmatpush.msra.mxu1 %v44_v43  ;;  %187 = vmatpush.msra.mxu0 %v27_v45  ;;  %v100_v8 = vld [vmem:[%s934_s1 + $0x268] sm:$0xff]  ;;  %v117_v9 = vld [vmem:[%s934_s1 + $0x2f0] sm:$0xff]  ;;  %v131_v10 = vld [vmem:[%s934_s1 + $0x360] sm:$0xff] }
  0x1a   :  { %247 = vmatpush.msra.mxu3 %v75_v46  ;;  %228 = vmatpush.msra.mxu2 %v58_v48  ;;  %v148_v11 = vld [vmem:[%s934_s1 + $0x3e8] sm:$0xff]  ;;  %v99_v12 = vld [vmem:[%s934_s1 + $0x260] sm:$0xff]  ;;  %v130_v15 = vld [vmem:[%s934_s1 + $0x358] sm:$0xff] }
  0x1b   :  { %207 = vmatpush.msra.mxu1 %v43_v47  ;;  %188 = vmatpush.msra.mxu0 %v26_v49  ;;  %v116_v13 = vld [vmem:[%s934_s1 + $0x2e8] sm:$0xff]  ;;  %v21_v14 = vld [vmem:[%s933_s0] sm:$0xff]  ;;  %v98_v17 = vld [vmem:[%s934_s1 + $0x258] sm:$0xff] }
  0x1c   :  { %248 = vmatpush.msra.mxu3 %v74_v50  ;;  %229 = vmatpush.msra.mxu2 %v57_v52  ;;  %v147_v16 = vld [vmem:[%s934_s1 + $0x3e0] sm:$0xff]  ;;  %157 = vst [vmem:[#allocation1] ss:$4 sm:$0xff] %v21_v14  ;;  %v129_v19 = vld [vmem:[%s934_s1 + $0x350] sm:$0xff]  ;;  %v146_v20 = vld [vmem:[%s934_s1 + $0x3d8] sm:$0xff] }
  0x1d   :  { %208 = vmatpush.msra.mxu1 %v42_v51  ;;  %189 = vmatpush.msra.mxu0 %v25_v53  ;;  %v115_v18 = vld [vmem:[%s934_s1 + $0x2e0] sm:$0xff]  ;;  %v97_v21 = vld [vmem:[%s934_s1 + $0x250] sm:$0xff]  ;;  %v114_v22 = vld [vmem:[%s934_s1 + $0x2d8] sm:$0xff] }
  0x1e   :  { %249 = vmatpush.msra.mxu3 %v73_v54  ;;  %230 = vmatpush.msra.mxu2 %v56_v56  ;;  %v128_v23 = vld [vmem:[%s934_s1 + $0x348] sm:$0xff]  ;;  %v145_v24 = vld [vmem:[%s934_s1 + $0x3d0] sm:$0xff]  ;;  %v127_v28 = vld [vmem:[%s934_s1 + $0x340] sm:$0xff] }
  0x1f   :  { %209 = vmatpush.msra.mxu1 %v41_v55  ;;  %190 = vmatpush.msra.mxu0 %v24_v57  ;;  %v22_v25 = vld [vmem:[%s933_s0 + $0x8] sm:$0xff]  ;;  %v113_v27 = vld [vmem:[%s934_s1 + $0x2d0] sm:$0xff]  ;;  %v95_v30 = vld [vmem:[%s934_s1 + $0x240] sm:$0xff] }
  0x20   :  { %250 = vmatpush.msra.mxu3 %v72_v58  ;;  %231 = vmatpush.msra.mxu2 %v55_v60  ;;  %v96_v26 = vld [vmem:[%s934_s1 + $0x248] sm:$0xff]  ;;  %159 = vst [vmem:[#allocation1 + $0x20] ss:$4 sm:$0xff] %v22_v25  ;;  %v126_v32 = vld [vmem:[%s934_s1 + $0x338] sm:$0xff]  ;;  %v143_v33 = vld [vmem:[%s934_s1 + $0x3c0] sm:$0xff] }
  0x21   :  { %210 = vmatpush.msra.mxu1 %v40_v59  ;;  %191 = vmatpush.msra.mxu0 %v23_v61  ;;  %v144_v29 = vld [vmem:[%s934_s1 + $0x3c8] sm:$0xff]  ;;  %v94_v34 = vld [vmem:[%s934_s1 + $0x238] sm:$0xff]  ;;  %v111_v35 = vld [vmem:[%s934_s1 + $0x2c0] sm:$0xff] }
  0x22   :  { %296 = vmatpush.msrb.mxu2 %v134_v62  ;;  %251 = vmatpush.msra.mxu3 %v71_v63  ;;  %v112_v31 = vld [vmem:[%s934_s1 + $0x2c8] sm:$0xff]  ;;  %v125_v36 = vld [vmem:[%s934_s1 + $0x330] sm:$0xff]  ;;  %v142_v37 = vld [vmem:[%s934_s1 + $0x3b8] sm:$0xff] }
  0x23   :  { %256 = vmatpush.msrb.mxu0 %v102_v0  ;;  %211 = vmatpush.msra.mxu1 %v39_v3  ;;  %v93_v38 = vld [vmem:[%s934_s1 + $0x230] sm:$0xff]  ;;  %v110_v39 = vld [vmem:[%s934_s1 + $0x2b8] sm:$0xff] }
  0x24   :  { %316 = vmatpush.msrb.mxu3 %v150_v1  ;;  %297 = vmatpush.msrb.mxu2 %v133_v2 }
  0x25   :  { %257 = vmatpush.msrb.mxu0 %v101_v4  ;;  %276 = vmatpush.msrb.mxu1 %v118_v5 }
  0x26   :  { %298 = vmatpush.msrb.mxu2 %v132_v6  ;;  %317 = vmatpush.msrb.mxu3 %v149_v7 }
  0x27   :  { %258 = vmatpush.msrb.mxu0 %v100_v8  ;;  %277 = vmatpush.msrb.mxu1 %v117_v9 }
  0x28   :  { %299 = vmatpush.msrb.mxu2 %v131_v10  ;;  %318 = vmatpush.msrb.mxu3 %v148_v11 }
  0x29   :  { %259 = vmatpush.msrb.mxu0 %v99_v12  ;;  %278 = vmatpush.msrb.mxu1 %v116_v13 }
  0x2a   :  { %300 = vmatpush.msrb.mxu2 %v130_v15  ;;  %319 = vmatpush.msrb.mxu3 %v147_v16 }
  0x2b   :  { %260 = vmatpush.msrb.mxu0 %v98_v17  ;;  %279 = vmatpush.msrb.mxu1 %v115_v18 }
  0x2c   :  { %301 = vmatpush.msrb.mxu2 %v129_v19  ;;  %320 = vmatpush.msrb.mxu3 %v146_v20 }
  0x2d   :  { %261 = vmatpush.msrb.mxu0 %v97_v21  ;;  %280 = vmatpush.msrb.mxu1 %v114_v22 }
  0x2e   :  { %302 = vmatpush.msrb.mxu2 %v128_v23  ;;  %321 = vmatpush.msrb.mxu3 %v145_v24 }
  0x2f   :  { %262 = vmatpush.msrb.mxu0 %v96_v26  ;;  %281 = vmatpush.msrb.mxu1 %v113_v27 }
  0x30   :  { %303 = vmatpush.msrb.mxu2 %v127_v28  ;;  %322 = vmatpush.msrb.mxu3 %v144_v29 }
  0x31   :  { %263 = vmatpush.msrb.mxu0 %v95_v30  ;;  %282 = vmatpush.msrb.mxu1 %v112_v31 }
  0x32   :  { %304 = vmatpush.msrb.mxu2 %v126_v32  ;;  %323 = vmatpush.msrb.mxu3 %v143_v33 }
  0x33   :  { %10 = vsyncpa [#allocation3], 0  ;;  %264 = vmatpush.msrb.mxu0 %v94_v34  ;;  %283 = vmatpush.msrb.mxu1 %v111_v35  ;;  %v124_v40 = vld [vmem:[%s934_s1 + $0x328] sm:$0xff]  ;;  %v141_v41 = vld [vmem:[%s934_s1 + $0x3b0] sm:$0xff]  ;;  %vm377_vm0 = vcmask 74752   ;;  %s410_s8 = sshll.u32 %s938_s5, 4  ;;  %s411_s8 = int_to_ptr.hbm [resolvable:$true] %s410_s8 }
  0x34   :  { %305 = vmatpush.msrb.mxu2 %v125_v36  ;;  %324 = vmatpush.msrb.mxu3 %v142_v37  ;;  %v92_v42 = vld [vmem:[%s934_s1 + $0x228] sm:$0xff]  ;;  %v109_v43 = vld [vmem:[%s934_s1 + $0x2b0] sm:$0xff]  ;;  %v123_v44 = vld [vmem:[%s934_s1 + $0x320] sm:$0xff] }
  0x35   :  { %265 = vmatpush.msrb.mxu0 %v93_v38  ;;  %284 = vmatpush.msrb.mxu1 %v110_v39  ;;  %v140_v45 = vld [vmem:[%s934_s1 + $0x3a8] sm:$0xff]  ;;  %v162_v46 = vld.sshfl [vmem:[#allocation1 + $0x10] sm:$0xff pattern:$0x73625140]  ;;  %v91_v47 = vld [vmem:[%s934_s1 + $0x220] sm:$0xff] }
  0x36   :  { %306 = vmatpush.msrb.mxu2 %v124_v40  ;;  %325 = vmatpush.msrb.mxu3 %v141_v41  ;;  %v108_v48 = vld [vmem:[%s934_s1 + $0x2a8] sm:$0xff]  ;;  %v122_v49 = vld [vmem:[%s934_s1 + $0x318] sm:$0xff]  ;;  %v139_v50 = vld [vmem:[%s934_s1 + $0x3a0] sm:$0xff] }
  0x37   :  { %266 = vmatpush.msrb.mxu0 %v92_v42  ;;  %285 = vmatpush.msrb.mxu1 %v109_v43  ;;  %v160_v51 = vld.sshfl [vmem:[#allocation1] sm:$0xff pattern:$0x73625140]  ;;  %v163_v52 = vld.sshfl [vmem:[#allocation1 + $0x18] sm:$0xff pattern:$0x73625140] }
  0x38   :  { %307 = vmatpush.msrb.mxu2 %v123_v44  ;;  %326 = vmatpush.msrb.mxu3 %v140_v45  ;;  %v90_v53 = vld [vmem:[%s934_s1 + $0x218] sm:$0xff]  ;;  %v107_v54 = vld [vmem:[%s934_s1 + $0x2a0] sm:$0xff]  ;;  %v121_v55 = vld [vmem:[%s934_s1 + $0x310] sm:$0xff] }
  0x39   :  { %232 = vmatmul.f32.vlgmr.msra.gmra.mxu2 %v162_v46  ;;  %267 = vmatpush.msrb.mxu0 %v91_v47  ;;  %v138_v56 = vld [vmem:[%s934_s1 + $0x398] sm:$0xff]  ;;  %v161_v57 = vld.sshfl [vmem:[#allocation1 + $0x8] sm:$0xff pattern:$0x73625140]  ;;  %v89_v58 = vld [vmem:[%s934_s1 + $0x210] sm:$0xff] }
  0x3a   :  { %286 = vmatpush.msrb.mxu1 %v108_v48  ;;  %308 = vmatpush.msrb.mxu2 %v122_v49  ;;  %v106_v59 = vld [vmem:[%s934_s1 + $0x298] sm:$0xff]  ;;  %v120_v60 = vld [vmem:[%s934_s1 + $0x308] sm:$0xff]  ;;  %v137_v61 = vld [vmem:[%s934_s1 + $0x390] sm:$0xff] }
  0x3b   :  { %327 = vmatpush.msrb.mxu3 %v139_v50  ;;  %192 = vmatmul.f32.vlgmr.msra.gmra.mxu0 %v160_v51  ;;  %v88_v62 = vld [vmem:[%s934_s1 + $0x208] sm:$0xff]  ;;  %v105_v63 = vld [vmem:[%s934_s1 + $0x290] sm:$0xff]  ;;  %v119_v0 = vld [vmem:[%s934_s1 + $0x300] sm:$0xff] }
  0x3c   :  { %252 = vmatmul.f32.vlgmr.msra.gmra.mxu3 %v163_v52  ;;  %268 = vmatpush.msrb.mxu0 %v90_v53  ;;  %v136_v1 = vld [vmem:[%s934_s1 + $0x388] sm:$0xff]  ;;  %v166_v2 = vld.sshfl [vmem:[#allocation1 + $0x30] sm:$0xff pattern:$0x73625140]  ;;  %v87_v3 = vld [vmem:[%s934_s1 + $0x200] sm:$0xff] }
  0x3d   :  { %287 = vmatpush.msrb.mxu1 %v107_v54  ;;  %309 = vmatpush.msrb.mxu2 %v121_v55  ;;  %v104_v4 = vld [vmem:[%s934_s1 + $0x288] sm:$0xff]  ;;  %v135_v5 = vld [vmem:[%s934_s1 + $0x380] sm:$0xff]  ;;  %v167_v7 = vld.sshfl [vmem:[#allocation1 + $0x38] sm:$0xff pattern:$0x73625140] }
  0x3e   :  { %328 = vmatpush.msrb.mxu3 %v138_v56  ;;  %212 = vmatmul.f32.vlgmr.msra.gmra.mxu1 %v161_v57  ;;  %v164_v6 = vld.sshfl [vmem:[#allocation1 + $0x20] sm:$0xff pattern:$0x73625140]  ;;  %v352_v9 = vld [vmem:[%s936_s3 + $0x78] sm:$0xff]  ;;  %v351_v11 = vld [vmem:[%s936_s3 + $0x70] sm:$0xff] }
  0x3f   :  { %269 = vmatpush.msrb.mxu0 %v89_v58  ;;  %288 = vmatpush.msrb.mxu1 %v106_v59  ;;  %v103_v8 = vld [vmem:[%s934_s1 + $0x280] sm:$0xff]  ;;  %v165_v10 = vld.sshfl [vmem:[#allocation1 + $0x28] sm:$0xff pattern:$0x73625140]  ;;  %v348_v14 = vld [vmem:[%s936_s3 + $0x58] sm:$0xff] }
  0x40   :  { %310 = vmatpush.msrb.mxu2 %v120_v60  ;;  %329 = vmatpush.msrb.mxu3 %v137_v61  ;;  %v350_v12 = vld [vmem:[%s936_s3 + $0x68] sm:$0xff]  ;;  %v349_v13 = vld [vmem:[%s936_s3 + $0x60] sm:$0xff]  ;;  %v347_v15 = vld [vmem:[%s936_s3 + $0x50] sm:$0xff] }
  0x41   :  { %270 = vmatpush.msrb.mxu0 %v88_v62  ;;  %289 = vmatpush.msrb.mxu1 %v105_v63  ;;  %v346_v16 = vld [vmem:[%s936_s3 + $0x48] sm:$0xff]  ;;  %v345_v17 = vld [vmem:[%s936_s3 + $0x40] sm:$0xff]  ;;  %v344_v18 = vld [vmem:[%s936_s3 + $0x38] sm:$0xff] }
  0x42   :  { %311 = vmatpush.msrb.mxu2 %v119_v0  ;;  %330 = vmatpush.msrb.mxu3 %v136_v1  ;;  %v343_v19 = vld [vmem:[%s936_s3 + $0x30] sm:$0xff]  ;;  %v342_v20 = vld [vmem:[%s936_s3 + $0x28] sm:$0xff]  ;;  %v341_v21 = vld [vmem:[%s936_s3 + $0x20] sm:$0xff] }
  0x43   :  { %312 = vmatmul.f32.vlgmr.msrb.gmra.mxu2 %v166_v2  ;;  %271 = vmatpush.msrb.mxu0 %v87_v3  ;;  %v340_v22 = vld [vmem:[%s936_s3 + $0x18] sm:$0xff]  ;;  %v339_v23 = vld [vmem:[%s936_s3 + $0x10] sm:$0xff]  ;;  %v338_v24 = vld [vmem:[%s936_s3 + $0x8] sm:$0xff] }
  0x44   :  { %290 = vmatpush.msrb.mxu1 %v104_v4  ;;  %331 = vmatpush.msrb.mxu3 %v135_v5  ;;  %v337_v25 = vld [vmem:[%s936_s3] sm:$0xff] }
  0x45   :  { %272 = vmatmul.f32.vlgmr.msrb.gmra.mxu0 %v164_v6  ;;  %332 = vmatmul.f32.vlgmr.msrb.gmra.mxu3 %v167_v7  ;;  %v420_v26 = vld [vmem:[%s935_s2] ss:$0 sm:$0xff] }
  0x46   :  { %291 = vmatpush.msrb.mxu1 %v103_v8  ;;  %357 = vmatpush.msra.mxu0 %v352_v9  ;;  %v421_v44 = vld [vmem:[%s937_s4] ss:$0 sm:$0xff]  ;;  %s452_s4 = smov [#allocation2]  }
  0x47   :  { %292 = vmatmul.f32.vlgmr.msrb.gmra.mxu1 %v165_v10  ;;  %s408_s0 = sshll.u32 %s452_s4, 4  ;;  %s409_s0 = int_to_ptr.vmem [resolvable:$true] %s408_s0 }
  0x48   :  { %358 = vmatpush.msra.mxu0 %v351_v11 }
  0x4a   :  { %359 = vmatpush.msra.mxu0 %v350_v12 }
  0x4c   :  { %360 = vmatpush.msra.mxu0 %v349_v13 }
  0x4e   :  { %361 = vmatpush.msra.mxu0 %v348_v14 }
  0x50   :  { %362 = vmatpush.msra.mxu0 %v347_v15 }
  0x52   :  { %363 = vmatpush.msra.mxu0 %v346_v16 }
  0x54   :  { %364 = vmatpush.msra.mxu0 %v345_v17 }
  0x56   :  { %365 = vmatpush.msra.mxu0 %v344_v18 }
  0x58   :  { %366 = vmatpush.msra.mxu0 %v343_v19 }
  0x5a   :  { %367 = vmatpush.msra.mxu0 %v342_v20 }
  0x5c   :  { %368 = vmatpush.msra.mxu0 %v341_v21 }
  0x5e   :  { %369 = vmatpush.msra.mxu0 %v340_v22 }
  0x60   :  { %370 = vmatpush.msra.mxu0 %v339_v23 }
  0x62   :  { %371 = vmatpush.msra.mxu0 %v338_v24 }
  0x64   :  { %372 = vmatpush.msra.mxu0 %v337_v25 }
  0xb8   :  { %v193_v27 = vpop.f32.mrf.mxu0 }
  0xb9   :  { %v194_v28 = vadd.f32 %v420_v26, %v193_v27 }
  0xbb   :  { %v213_v29 = vpop.f32.mrf.mxu1 }
  0xbc   :  { %v214_v30 = vadd.f32 %v213_v29, %v194_v28  ;;  %v233_v31 = vpop.f32.mrf.mxu2 }
  0xbe   :  { %v234_v32 = vadd.f32 %v233_v31, %v214_v30 }
  0xbf   :  { %v253_v33 = vpop.f32.mrf.mxu3 }
  0xc0   :  { %v254_v34 = vadd.f32 %v253_v33, %v234_v32 }
  0xc2   :  { %v273_v35 = vpop.f32.mrf.mxu0 }
  0xc3   :  { %v274_v36 = vadd.f32 %v273_v35, %v254_v34 }
  0xc4   :  { %v293_v37 = vpop.f32.mrf.mxu1 }
  0xc5   :  { %v294_v38 = vadd.f32 %v293_v37, %v274_v36 }
  0xc6   :  { %v313_v39 = vpop.f32.mrf.mxu2 }
  0xc7   :  { %v314_v40 = vadd.f32 %v313_v39, %v294_v38 }
  0xc8   :  { %v333_v41 = vpop.f32.mrf.mxu3 }
  0xc9   :  { %v334_v42 = vadd.f32 %v333_v41, %v314_v40 }
  0xcb   :  { %v336_v43 = vmax.f32 %v334_v42, 0.0 }
  0xcd   :  { %373 = vmatmul.f32.vlgmr.msra.gmra.mxu0 %v336_v43 }
 0x14a   :  { %v374_v45 = vpop.f32.mrf.mxu0 }
 0x14b   :  { %v375_v46 = vadd.f32 %v421_v44, %v374_v45 }
 0x14d   :  { %v378_v47 = vsel %vm377_vm0, %v375_v46, -inf }
 0x14e   :  { %379 = vmax.xlane.f32.xlu0 %v378_v47 }
 0x1c1   :  { %v380_v48 = vpop.xlane.xlu0 %379 }
 0x1c2   :  { %v381_v49 = vsub.f32 %v375_v46, %v380_v48 }
 0x1c4   :  { %v382_v50 = vmul.f32 1.442695, %v381_v49 }
 0x1c6   :  { %422 = vpow2.f32 %v382_v50 }
 0x1cc   :  { %v423_v51 = vpop.eup %422 }
 0x1cd   :  { %v384_v52 = vsel %vm377_vm0, %v423_v51, 0.0 }
 0x1ce   :  { %385 = vadd.xlane.f32.xlu0 %v384_v52 }
 0x241   :  { %v386_v53 = vpop.xlane.xlu0 %385 }
 0x242   :  { %424 = vrcp.f32 %v386_v53  ;;  %v398_v57 = vand.u32 2147483648, %v386_v53  ;;  %v396_v59 = vand.u32 2147483647, %v386_v53  ;;  %vm392_vm2 = vweird.f32 %v386_v53 }
 0x244   :  { %v399_v61 = vor.u32 1.1754944e-38, %v398_v57  ;;  %vm397_vm4 = vcmp.eq.f32.partialorder %v396_v59, 8.507059e+37 }
 0x248   :  { %v425_v54 = vpop.eup %424 }
 0x249   :  { %v388_v55 = vmul.f32 %v425_v54, %v386_v53  ;;  %vm393_vm1 = vweird.f32 %v425_v54 }
 0x24a   :  { %vm394_vm3 = vmor %vm392_vm2, %vm393_vm1 }
 0x24b   :  { %v389_v56 = vsub.f32 1.0, %v388_v55 }
 0x24d   :  { %v390_v58 = vmul.f32 %v425_v54, %v389_v56 }
 0x24f   :  { %v391_v60 = vadd.f32 %v425_v54, %v390_v58 }
 0x251   :  { %v395_v62 = vsel %vm394_vm3, %v425_v54, %v391_v60 }
 0x252   :  { %v400_v63 = vsel %vm397_vm4, %v399_v61, %v395_v62 }
 0x253   :  { %v401_v0 = vmul.f32 %v423_v51, %v400_v63 }
 0x255   :  { %402 = vst.msk [vmem:[#allocation2] sm:$0x3] %vm377_vm0, %v401_v0 }
 0x256   :  { %413 = dma.vmem_to_hbm [thread:$0]  %s409_s0, 32, %s411_s8, [#allocation3]  }
 0x257   :  { %450 = dma.done.wait [#allocation3], 32  }
 0x258   :  { %451 = vsyncadd [#allocation3], 4294967264 }
 0x259   :  { %418 = vsyncpa [#allocation3], 1 }

</bundles_post_ra>
